<compile_context>
chip_gen: v7x
topology: tpu7x:2x2x1
jax: 0.10.0
libtpu: 0.0.40
codegen_flags: <defaults>
</compile_context>

<pallas_src>
import jax
import jax.numpy as jnp
from jax.experimental import pallas as pl
from jax.experimental.pallas import tpu as pltpu

NUM_FEATURES = 512  # resnet18 fc.in_features
_LANE = 128
_MiB = 1024 * 1024


def _head_kernel(feat_ref, w1_ref, b1_ref, w2t_ref, b2_ref, out_ref):
    # feat_ref: [TB, HW, C]  (trunk conv output tile, channels-last, spatial flat)
    hw = feat_ref.shape[1]

    # AdaptiveAvgPool2d((1,1)) + squeeze()  ->  [TB, C]
    # Reduce directly into f32 (no materialized f32 copy of the feature tile).
    pooled = jnp.sum(feat_ref[...], axis=1, dtype=jnp.float32) * jnp.float32(1.0 / hw)

    # res_l1: Linear(C, C) on the MXU (bf16 operands, f32 accumulation), then ReLU.
    x2 = jnp.dot(
        pooled.astype(w1_ref.dtype),
        w1_ref[...],
        preferred_element_type=jnp.float32,
    )
    x2 = jnp.maximum(x2 + b1_ref[...], 0.0)        # b1: [1, C], broadcasts over TB

    # res_l2: Linear(C, 1). w2 is passed transposed as [1, C] (lane-dense), so
    # this is an elementwise multiply + lane (XLU) reduction, not an N=1 matmul.
    x3 = jnp.sum(x2 * w2t_ref[...], axis=-1, keepdims=True)
    x3 = x3 + b2_ref[0, 0]                         # b2 scalar from SMEM

    # Exact sigmoid: only [TB, 1] values, so the precise divide is essentially
    # free and avoids approx-reciprocal error on the model's final output.
    out_ref[...] = (1.0 / (1.0 + jnp.exp(-x3))).astype(out_ref.dtype)


def _round_up(x, m):
    return ((x + m - 1) // m) * m


def _vmem_capacity_bytes():
    """Per-core VMEM capacity (v5e/v6e: 128 MiB, v7x: 64 MiB), best-effort."""
    try:
        info = pltpu.get_tpu_info()
        cap = getattr(info, "vmem_capacity_bytes", None)
        if cap:
            return int(cap)
    except Exception:
        pass
    try:
        kind = jax.devices()[0].device_kind.lower()
        if "v7" in kind:
            return 64 * _MiB
    except Exception:
        pass
    return 128 * _MiB


def _vmem_limit_bytes():
    """Scoped VMEM budget: 3/4 of physical, capped at 96 MiB.

    v5e/v6e (128 MiB physical) -> 96 MiB;  v7x (64 MiB per TC) -> 48 MiB.
    """
    return int(min(_vmem_capacity_bytes() * 3 // 4, 96 * _MiB))


def _padded_dims(hw, c, feat_itemsize):
    # sublane tile depends on dtype packing: f32 -> 8, bf16 -> 16, 8-bit -> 32.
    sublane = 8 * max(1, 4 // feat_itemsize)
    return _round_up(hw, sublane), _round_up(c, _LANE)


def _pick_batch_tile(b, hw, c, feat_itemsize, vmem_limit_bytes):
    """Largest batch tile whose double-buffered feat tiles (plus the resident
    w1/b1/w2t buffers, in-kernel f32 intermediates and out tile) fit the scoped
    VMEM limit.  Also clamps so the grid has >= 2 (preferably an even number
    of) steps when B >= 16, so the "parallel" batch axis shards across both
    v7x TensorCores with balanced load.
    """
    padded_hw, padded_c = _padded_dims(hw, c, feat_itemsize)

    # VMEM that does not scale with tb: resident (still double-buffered)
    # w1 (bf16) + b1 + w2t (f32, 1-row blocks pad to 8 sublanes).
    fixed = 2 * (padded_c * padded_c * 2 + 2 * 8 * padded_c * 4)
    headroom = 2 * _MiB  # compiler temporaries, semaphores, etc.

    # Per batch-row VMEM: 2x double-buffered feat rows + ~4 f32 per-row
    # intermediates (pooled, bf16 cast, x2, x2*w2t) + double-buffered out row.
    per_row = (
        2 * padded_hw * padded_c * feat_itemsize
        + 4 * padded_c * 4
        + 2 * _LANE * 4
    )
    max_rows = max(8, (vmem_limit_bytes - fixed - headroom) // max(per_row, 1))

    tb = min(b, max_rows)               # no MXU-M cap: the kernel is HBM-bound
    if tb < b:
        tb = max(8, (tb // 8) * 8)

    # v7x megacore: guarantee at least 2 grid steps ...
    if b >= 16:
        tb = min(tb, _round_up(-(-b // 2), 8))
    # ... and prefer an even step count so the two cores stay balanced.
    if tb < b and (-(-b // tb)) % 2 == 1:
        cand = tb - 8
        while cand >= 8:
            if (-(-b // cand)) % 2 == 0:
                tb = cand
                break
            cand -= 8
    return tb


def angle_prediction_head(feat, w1, b1, w2t, b2, *, tb=None, vmem_limit_bytes=None):
    """feat: [B, HW, C]; w1: [C, C]; b1: [1, C]; w2t: [1, C]; b2: [1, 1]."""
    B, HW, C = feat.shape
    if vmem_limit_bytes is None:
        vmem_limit_bytes = _vmem_limit_bytes()
    if tb is None:
        tb = _pick_batch_tile(B, HW, C, feat.dtype.itemsize, vmem_limit_bytes)
    n_steps = pl.cdiv(B, tb)

    # Deeper feat buffering only when the pipeline is long enough to benefit,
    # the tiles are small (per-step DMA no longer hides the fixed step overhead,
    # relevant on v7x's faster HBM), and a third buffer clearly still fits.
    padded_hw, padded_c = _padded_dims(HW, C, feat.dtype.itemsize)
    feat_tile_bytes = tb * padded_hw * padded_c * feat.dtype.itemsize
    feat_buffers = 2
    if (
        n_steps >= 3
        and feat_tile_bytes <= 2 * _MiB
        and 3 * feat_tile_bytes + 4 * _MiB <= vmem_limit_bytes
    ):
        feat_buffers = 3

    feat_spec_kwargs = {}
    if feat_buffers > 2:
        feat_spec_kwargs["pipeline_mode"] = pl.Buffered(feat_buffers)

    grid_spec = pl.GridSpec(
        grid=(n_steps,),
        in_specs=[
            # feature tile walks the batch axis; weights stay VMEM-resident.
            pl.BlockSpec((tb, HW, C), lambda i: (i, 0, 0), **feat_spec_kwargs),
            pl.BlockSpec((C, C), lambda i: (0, 0)),
            pl.BlockSpec((1, C), lambda i: (0, 0)),
            pl.BlockSpec((1, C), lambda i: (0, 0)),
            pl.BlockSpec(memory_space=pltpu.SMEM),   # b2 scalar in SMEM
        ],
        out_specs=pl.BlockSpec((tb, 1), lambda i: (i, 0)),
    )

    cost = pl.CostEstimate(
        flops=2 * B * HW * C + 2 * B * C * C + 2 * B * C,
        transcendentals=B,
        bytes_accessed=(
            feat.size * feat.dtype.itemsize
            + w1.size * w1.dtype.itemsize
            + b1.size * b1.dtype.itemsize
            + w2t.size * w2t.dtype.itemsize
            + b2.size * b2.dtype.itemsize
            + B * 4
        ),
    )

    return pl.pallas_call(
        _head_kernel,
        out_shape=jax.ShapeDtypeStruct((B, 1), jnp.float32),
        grid_spec=grid_spec,
        compiler_params=pltpu.CompilerParams(
            dimension_semantics=("parallel",),
            vmem_limit_bytes=int(vmem_limit_bytes),
        ),
        cost_estimate=cost,
    )(feat, w1, b1, w2t, b2)


def _reference(feat, w1, b1, w2t, b2):
    pooled = jnp.mean(feat.astype(jnp.float32), axis=1)
    x2 = jnp.maximum(pooled @ w1.astype(jnp.float32) + b1, 0.0)
    x3 = jnp.sum(x2 * w2t, axis=-1, keepdims=True) + b2
    return jax.nn.sigmoid(x3)


if __name__ == "__main__":
    key = jax.random.PRNGKey(0)
    k_feat, k_w1, k_b1, k_w2, k_b2 = jax.random.split(key, 5)

    B, H, W, C = 16, 4, 4, NUM_FEATURES   # small trunk-output feature map
    HW = H * W

    # Trunk output feature maps (stand-in for res_features(img) pre-avgpool),
    # already laid out channels-last and spatially flattened. bf16 in HBM.
    feat = jax.random.normal(k_feat, (B, HW, C), dtype=jnp.float32).astype(jnp.bfloat16)

    # Deterministic head parameters. PyTorch Linear stores weight as [out, in]
    # and computes x @ W.T + b; we pass transposed weights directly.
    # w1 is stored in bf16 (MXU bf16 path, f32 accumulation in-kernel).
    w1 = (jax.random.normal(k_w1, (C, C), dtype=jnp.float32)
          * (1.0 / jnp.sqrt(C))).astype(jnp.bfloat16)
    b1 = jax.random.normal(k_b1, (1, C), dtype=jnp.float32) * 0.01
    # w2 passed lane-dense as [1, C] (transpose of the [C, 1] column).
    w2t = jax.random.normal(k_w2, (1, C), dtype=jnp.float32) * (1.0 / jnp.sqrt(C))
    b2 = jax.random.normal(k_b2, (1, 1), dtype=jnp.float32) * 0.01

    # Auto tile selection: B=16 triggers the ">= 2 grid steps" clamp, so this
    # exercises a multi-step grid (grid=(2,)) with weights resident across steps.
    out = angle_prediction_head(feat, w1, b1, w2t, b2)
    out = jax.block_until_ready(out)

    ref = _reference(feat, w1, b1, w2t, b2)
    assert out.shape == (B, 1), out.shape
    # bf16 weights/activations -> loose tolerance (sigmoid itself is exact now).
    assert jnp.allclose(out, ref, atol=1e-2, rtol=1e-2), (out, ref)

    print("KERNEL_OK")
</pallas_src>

<mosaic_0001>
module attributes {stable_mosaic.version = 11 : i64} {
  func.func @_head_kernel(%arg0: i32, %arg1: memref<8x16x512xbf16, #tpu.memory_space<vmem>>, %arg2: memref<512x512xbf16, #tpu.memory_space<vmem>>, %arg3: memref<1x512xf32, #tpu.memory_space<vmem>>, %arg4: memref<1x512xf32, #tpu.memory_space<vmem>>, %arg5: memref<1x1xf32, #tpu.memory_space<smem>>, %arg6: memref<8x1xf32, #tpu.memory_space<vmem>>) attributes {dimension_semantics = [#tpu.dimension_semantics<parallel>], iteration_bounds = array<i64: 2>, scalar_prefetch = 0 : i64, scratch_operands = 0 : i64, tpu.core_type = #tpu.core_type<tc>, window_params = [{transform_indices = @transform_0, window_bounds = array<i64: 8, 16, 512>}, {pipeline_mode = #tpu.pipeline_mode<synchronous>, transform_indices = @transform_1, window_bounds = array<i64: 512, 512>}, {pipeline_mode = #tpu.pipeline_mode<synchronous>, transform_indices = @transform_2, window_bounds = array<i64: 1, 512>}, {pipeline_mode = #tpu.pipeline_mode<synchronous>, transform_indices = @transform_3, window_bounds = array<i64: 1, 512>}, {transform_indices = @transform_4, window_bounds = array<i64: 1, 1>}, {transform_indices = @transform_5, window_bounds = array<i64: 8, 1>}]} {
    %c0 = arith.constant 0 : index
    %c0_0 = arith.constant 0 : index
    %c0_1 = arith.constant 0 : index
    %0 = vector.load %arg1[%c0, %c0_0, %c0_1] : memref<8x16x512xbf16, #tpu.memory_space<vmem>>, vector<8x16x512xbf16>
    %1 = arith.extf %0 : vector<8x16x512xbf16> to vector<8x16x512xf32>
    %cst = arith.constant dense<0.000000e+00> : vector<8x512xf32>
    %2 = vector.multi_reduction <add>, %1, %cst [1] : vector<8x16x512xf32> to vector<8x512xf32>
    %cst_2 = arith.constant 6.250000e-02 : f32
    %3 = vector.broadcast %cst_2 : f32 to vector<8x512xf32>
    %4 = arith.mulf %2, %3 : vector<8x512xf32>
    %5 = arith.truncf %4 : vector<8x512xf32> to vector<8x512xbf16>
    %c0_3 = arith.constant 0 : index
    %c0_4 = arith.constant 0 : index
    %6 = vector.load %arg2[%c0_3, %c0_4] : memref<512x512xbf16, #tpu.memory_space<vmem>>, vector<512x512xbf16>
    %cst_5 = arith.constant dense<0.000000e+00> : vector<8x512xf32>
    %7 = tpu.matmul %5, %6, %cst_5 {dimension_numbers = #tpu.dot_dimension_numbers<[1], [0], [0], [1], [0, 0, 1, 1], [], []>} : vector<8x512xbf16>, vector<512x512xbf16>, vector<8x512xf32> -> vector<8x512xf32>
    %c0_6 = arith.constant 0 : index
    %c0_7 = arith.constant 0 : index
    %8 = vector.load %arg3[%c0_6, %c0_7] : memref<1x512xf32, #tpu.memory_space<vmem>>, vector<1x512xf32>
    %9 = vector.broadcast %8 : vector<1x512xf32> to vector<8x512xf32>
    %10 = arith.addf %7, %9 : vector<8x512xf32>
    %cst_8 = arith.constant 0.000000e+00 : f32
    %11 = vector.broadcast %cst_8 : f32 to vector<8x512xf32>
    %12 = arith.maximumf %10, %11 : vector<8x512xf32>
    %c0_9 = arith.constant 0 : index
    %c0_10 = arith.constant 0 : index
    %13 = vector.load %arg4[%c0_9, %c0_10] : memref<1x512xf32, #tpu.memory_space<vmem>>, vector<1x512xf32>
    %14 = vector.broadcast %13 : vector<1x512xf32> to vector<8x512xf32>
    %15 = arith.mulf %12, %14 : vector<8x512xf32>
    %cst_11 = arith.constant dense<0.000000e+00> : vector<8xf32>
    %16 = vector.multi_reduction <add>, %15, %cst_11 [1] : vector<8x512xf32> to vector<8xf32>
    %17 = vector.shape_cast %16 : vector<8xf32> to vector<8x1xf32>
    %c0_12 = arith.constant 0 : index
    %c0_13 = arith.constant 0 : index
    %18 = memref.load %arg5[%c0_12, %c0_13] : memref<1x1xf32, #tpu.memory_space<smem>>
    %19 = vector.broadcast %18 : f32 to vector<8x1xf32>
    %20 = arith.addf %17, %19 : vector<8x1xf32>
    %cst_14 = arith.constant 0.000000e+00 : f32
    %21 = vector.broadcast %cst_14 : f32 to vector<8x1xf32>
    %22 = arith.subf %21, %20 : vector<8x1xf32>
    %23 = math.exp %22 : vector<8x1xf32>
    %cst_15 = arith.constant 1.000000e+00 : f32
    %24 = vector.broadcast %cst_15 : f32 to vector<8x1xf32>
    %25 = arith.addf %24, %23 : vector<8x1xf32>
    %cst_16 = arith.constant 1.000000e+00 : f32
    %26 = vector.broadcast %cst_16 : f32 to vector<8x1xf32>
    %27 = arith.divf %26, %25 : vector<8x1xf32>
    %c0_17 = arith.constant 0 : index
    %c0_18 = arith.constant 0 : index
    %28 = vector.load %arg6[%c0_17, %c0_18] : memref<8x1xf32, #tpu.memory_space<vmem>>, vector<8x1xf32>
    tpu.vector_store %arg6[%c0_17, %c0_18], %27 {strides = array<i32>} : memref<8x1xf32, #tpu.memory_space<vmem>>, vector<8x1xf32>,
    return
  }
  func.func @transform_0(%arg0: i32) -> (i32, i32, i32) {
    %c0_i32 = arith.constant 0 : i32
    %c0_i32_0 = arith.constant 0 : i32
    %c0_i32_1 = arith.constant 0 : i32
    return %arg0, %c0_i32, %c0_i32_0 : i32, i32, i32
  }
  func.func @transform_1(%arg0: i32) -> (i32, i32) {
    %c0_i32 = arith.constant 0 : i32
    %c0_i32_0 = arith.constant 0 : i32
    %c0_i32_1 = arith.constant 0 : i32
    return %c0_i32, %c0_i32_0 : i32, i32
  }
  func.func @transform_2(%arg0: i32) -> (i32, i32) {
    %c0_i32 = arith.constant 0 : i32
    %c0_i32_0 = arith.constant 0 : i32
    %c0_i32_1 = arith.constant 0 : i32
    return %c0_i32, %c0_i32_0 : i32, i32
  }
  func.func @transform_3(%arg0: i32) -> (i32, i32) {
    %c0_i32 = arith.constant 0 : i32
    %c0_i32_0 = arith.constant 0 : i32
    %c0_i32_1 = arith.constant 0 : i32
    return %c0_i32, %c0_i32_0 : i32, i32
  }
  func.func @transform_4(%arg0: i32) -> (i32, i32) {
    %c0_i32 = arith.constant 0 : i32
    %c0_i32_0 = arith.constant 0 : i32
    %c0_i32_1 = arith.constant 0 : i32
    return %c0_i32, %c0_i32_0 : i32, i32
  }
  func.func @transform_5(%arg0: i32) -> (i32, i32) {
    %c0_i32 = arith.constant 0 : i32
    %c0_i32_0 = arith.constant 0 : i32
    return %arg0, %c0_i32 : i32, i32
  }
}

</mosaic_0001>

<bundles_post_ra>
// kernel: tpu_custom_call.1
= control target key start
LH: loop header
LB: loop body
LE: loop exit
PB: predicated region body
PF: predicated region fallthrough
CT: control target
= control target key end

     0   :  { %s3075_s0 = inlined_call_operand.hbm [shape: bf16[16,16,512], index: 0, kind: input, shape index: {}]   ;;  %s3076_s1 = inlined_call_operand.hbm [shape: bf16[512,512], index: 1, kind: input, shape index: {}]   ;;  %s3077_s2 = inlined_call_operand.hbm [shape: f32[1,512], index: 2, kind: input, shape index: {}]   ;;  %s3078_s3 = inlined_call_operand.hbm [shape: f32[1,512], index: 3, kind: input, shape index: {}]   ;;  %s3079_s4 = inlined_call_operand.<no memory space> [shape: f32[1,1], index: 4, kind: input, shape index: {}]   ;;  %s3080_s5 = inlined_call_operand.hbm [shape: f32[16,1], index: 5, kind: output, shape index: {}]  }
   0x1   :  { %10 = sst [smem:[#allocation2]] %s3079_s4 }
   0x2   :  { %11 = vsyncpa [#allocation4], 0 }
   0x3   :  { %13 = vsyncpa [#allocation4 + $0x1], 0 }
   0x4   :  { %14 = vsyncpa [#allocation7], 0 }
   0x5   :  { %15 = vsyncpa [#allocation10], 0 }
   0x6   :  { %16 = vsyncpa [#allocation5], 0 }
   0x7   :  { %18 = vsyncpa [#allocation5 + $0x1], 0  ;;  %s2557_s20 = smov 0   ;;  %s2559_s21 = smov 0  }
   0x8   :  { %s2561_s22 = smov 0   ;;  %s2563_s23 = smov 0  }
   0x9 LB: > { %s2578_s4 = sadd.s32 4294967295, %s2515_s23   ;;  %s1890_s24 = sadd.s32 4294967294, %s2515_s23   ;;  %s2515_s23 = sphi %s2563_s23, %s3111_s23   ;;  %s2511_s22 = sphi %s2561_s22, %s3110_s22   ;;  %s2507_s21 = sphi %s2559_s21, %s3109_s21   ;;  %s2503_s20 = sphi %s2557_s20, %s3108_s20  }
   0xa   : > { %p44_p0 = scmp.ne.s32.totalorder %s2507_s21, %s2503_s20  ;;  %p3081_p1 = scmp.eq.s32.totalorder %s2578_s4, 0 }
   0xb   : > { %p158_p3 = scmp.eq.s32.totalorder %s1890_s24, 1  ;;  %p1891_p5 = scmp.ge.s32.totalorder %s2515_s23, 1 }
   0xc   : > { %p2587_p4 = por %p3081_p1, %p44_p0  ;;  %p165_p7 = scmp.lt.s32.totalorder %s2515_s23, 3 }
   0xd   : > { %p2592_p6 = por %p158_p3, %p44_p0  ;;  %s2517_s28 = smov [#allocation6]  }
   0xe   : > { %s3084_s25 = scalar_select %p2587_p4, 1, 0 }
   0xf   : > { %s3085_s26 = scalar_select %p2592_p6, 1, 0 }
  0x10   : > { %p2597_p8 = pnand %p1891_p5, %p165_p7  ;;  %s177_s29 = sshll.u32 %s2517_s28, 4  ;;  %s2601_s29 = int_to_ptr.vmem [resolvable:$true] %s177_s29 }
  0x11   : > { %s2518_s6 = smov [#allocation8]   ;;  %s2519_s8 = smov [#allocation9]  }
  0x12   : > { %s3086_s27 = scalar_select %p2597_p8, 1, 0 }
  0x13   : > { %p2068_p9 = pneg %p2597_p8  ;;  %s191_s7 = sshll.u32 %s2518_s6, 4  ;;  %s2612_s7 = int_to_ptr.vmem [resolvable:$true] %s191_s7 }
  0x14   : > { %s2614_s9 = sshll.u32 %s2519_s8, 4  ;;  %s2327_s12 = scalar_lea.hbm %s3076_s1, 16384  ;;  %s203_s9 = int_to_ptr.vmem [resolvable:$true] %s2614_s9 }
  0x15   : > { %p2608_p11 = pnand %p2068_p9, %p3081_p1  ;;  %p2328_p12 = scmp.ne.s32.totalorder %s3076_s1, %s2327_s12 }
  0x16   : > { %p2334_p5 = scmp.lt.u32.totalorder %s2327_s12, %s3076_s1 }
  0x17   : > { %p2624_p13 = pneg %p2608_p11 }
  0x19   : > { %p2330_p0 = pnand %p2624_p13, %p2328_p12 }
  0x1b   : > { %p2331_p3 = pneg %p2330_p0 }
  0x1d   : > { %p2336_p7 = pnand %p2334_p5, %p2331_p3 }
  0x1f   : > { %2339 = shalt.err (!%p2336_p7)
}
  0x20   : > { %s2340_s18 = scalar_lea.vmem %s2601_s29, 16384  ;;  %p2348_p2 = scmp.lt.s32.totalorder %s2601_s29, %s2601_s29 }
  0x21   : > { %p2341_p9 = scmp.ne.s32.totalorder %s2601_s29, %s2340_s18  ;;  %p2349_p6 = scmp.lt.s32.totalorder %s2340_s18, %s2340_s18 }
  0x23   : > { %p2343_p10 = pnand %p2341_p9, %p2624_p13  ;;  %p2350_p12 = por %p2349_p6, %p2348_p2 }
  0x25   : > { %p2344_p1 = pneg %p2343_p10 }
  0x27   : > { %p2351_p0 = pnand %p2350_p12, %p2344_p1 }
  0x29   : > { %2354 = shalt.err (!%p2351_p0)
}
  0x2a   : > { %s2520_s19 = smov 256   ;;  %s2521_s24 = smov 16  }
  0x2b   : > { %2071 = dma.hbm_to_vmem [thread:$0]  (!%p2608_p11), %s3076_s1, 16384, %s2601_s29, [#allocation7], %s2520_s19, %s2520_s19, %s2521_s24  }
  0x2c   : > { %s2355_s11 = scalar_lea.hbm %s3077_s2, 64 }
  0x2d   : > { %p2356_p1 = scmp.ne.s32.totalorder %s3077_s2, %s2355_s11  ;;  %p2362_p10 = scmp.lt.u32.totalorder %s2355_s11, %s3077_s2 }
  0x2f   : > { %p2358_p2 = pnand %p2356_p1, %p2624_p13 }
  0x31   : > { %p2359_p6 = pneg %p2358_p2 }
  0x33   : > { %p2364_p3 = pnand %p2362_p10, %p2359_p6 }
  0x35   : > { %2367 = shalt.err (!%p2364_p3)
}
  0x36   : > { %s2368_s29 = scalar_lea.vmem %s2612_s7, 64  ;;  %p2376_p12 = scmp.lt.s32.totalorder %s2612_s7, %s2612_s7 }
  0x37   : > { %p2369_p5 = scmp.ne.s32.totalorder %s2612_s7, %s2368_s29  ;;  %p2377_p0 = scmp.lt.s32.totalorder %s2368_s29, %s2368_s29 }
  0x39   : > { %p2371_p7 = pnand %p2369_p5, %p2624_p13  ;;  %p2378_p1 = por %p2377_p0, %p2376_p12 }
  0x3b   : > { %p2372_p9 = pneg %p2371_p7 }
  0x3d   : > { %p2379_p2 = pnand %p2378_p1, %p2372_p9 }
  0x3f   : > { %2382 = shalt.err (!%p2379_p2)
}
  0x40   : > { %2074 = dma.hbm_to_vmem [thread:$0]  (!%p2608_p11), %s3077_s2, 64, %s2612_s7, [#allocation7]  }
  0x41   : > { %s2383_s8 = scalar_lea.hbm %s3078_s3, 64 }
  0x42   : > { %p2384_p6 = scmp.ne.s32.totalorder %s3078_s3, %s2383_s8  ;;  %p2390_p5 = scmp.lt.u32.totalorder %s2383_s8, %s3078_s3 }
  0x44   : > { %p2386_p10 = pnand %p2384_p6, %p2624_p13 }
  0x46   : > { %p2387_p3 = pneg %p2386_p10 }
  0x48   : > { %p2392_p7 = pnand %p2390_p5, %p2387_p3 }
  0x4a   : > { %2395 = shalt.err (!%p2392_p7)
}
  0x4b   : > { %s2396_s14 = scalar_lea.vmem %s203_s9, 64  ;;  %p2404_p1 = scmp.lt.s32.totalorder %s203_s9, %s203_s9 }
  0x4c   : > { %p2397_p9 = scmp.ne.s32.totalorder %s203_s9, %s2396_s14  ;;  %p2405_p2 = scmp.lt.s32.totalorder %s2396_s14, %s2396_s14 }
  0x4e   : > { %p2399_p12 = pnand %p2397_p9, %p2624_p13  ;;  %p2406_p4 = por %p2405_p2, %p2404_p1 }
  0x50   : > { %p2400_p0 = pneg %p2399_p12 }
  0x52   : > { %p2407_p8 = pnand %p2406_p4, %p2400_p0 }
  0x54   : > { %2410 = shalt.err (!%p2407_p8)
}
  0x55   : > { %2077 = dma.hbm_to_vmem [thread:$0]  (!%p2608_p11), %s3078_s3, 64, %s203_s9, [#allocation10]  }
  0x56   : > { %s2691_s15 = sadd.s32 1, %s2515_s23   ;;  %s31_s30 = sadd.s32 1, %s2511_s22 }
  0x57   : > { %s28_s29 = ssub.s32 %s2515_s23, %s2691_s15  ;;  %p38_p8 = scmp.ne.s32.totalorder %s2511_s22, %s2507_s21 }
  0x58   : > { %p29_p4 = scmp.eq.s32.totalorder %s28_s29, 0  ;;  %p39_p13 = scmp.eq.s32.totalorder %s2515_s23, 0 }
  0x59   : > { %p2089_p6 = scmp.lt.s32.totalorder %s2515_s23, 2  ;;  %p3089_p3 = scmp.eq.s32.totalorder %s2578_s4, 1 }
  0x5a   : > { %s2701_s17 = scalar_select %p29_p4, %s2511_s22, %s31_s30  }
  0x5b   : > { %p40_p10 = por %p39_p13, %p38_p8  ;;  %p2705_p5 = por %p3089_p3, %p38_p8 }
  0x5c   : > { %s216_s28 = sand.u32 1, %s2511_s22   ;;  %s2039_s6 = sshll.u32 %s2515_s23, 12 }
  0x5d   : > { %s1896_s9 = sshll.u32 %s216_s28, 8  ;;  %s2714_s11 = scalar_lea.hbm %s3075_s0, %s2039_s6 }
  0x5e   : > { %s220_s12 = scalar_lea.vmem [#allocation3], %s1896_s9  ;;  %p2716_p11 = pnand %p2089_p6, %p40_p10 }
  0x5f   : > { %s228_s13 = sshll.u32 %s220_s12, 4  ;;  %s2722_s7 = scalar_lea.sflag [#allocation4], %s216_s28  ;;  %s2720_s13 = int_to_ptr.vmem [resolvable:$true] %s228_s13 }
  0x60   : > { %s2411_s16 = scalar_lea.hbm %s2714_s11, 4096  ;;  %p2413_p9 = pneg %p2716_p11 }
  0x61   : > { %p2412_p7 = scmp.ne.s32.totalorder %s2714_s11, %s2411_s16  ;;  %s2416_s6 = scalar_lea.hbm %s3075_s0, 8192 }
  0x62   : > { %p2417_p1 = scmp.lt.u32.totalorder %s2714_s11, %s3075_s0  ;;  %p2418_p2 = scmp.lt.u32.totalorder %s2416_s6, %s2411_s16 }
  0x63   : > { %p2414_p12 = pnand %p2413_p9, %p2412_p7  ;;  %p2420_p8 = scmp.lt.u32.totalorder %s2411_s16, %s2714_s11 }
  0x64   : > { %p2419_p4 = por %p2418_p2, %p2417_p1 }
  0x65   : > { %p2415_p0 = pneg %p2414_p12 }
  0x66   : > { %p2421_p13 = por %p2420_p8, %p2419_p4 }
  0x68   : > { %p2422_p6 = pnand %p2421_p13, %p2415_p0 }
  0x6a   : > { %2425 = shalt.err (!%p2422_p6)
}
  0x6b   : > { %s2426_s28 = scalar_lea.vmem %s2720_s13, 4096  ;;  %s2522_s10 = smov [#allocation3]  }
  0x6c   : > { %p2427_p10 = scmp.ne.s32.totalorder %s2720_s13, %s2426_s28  ;;  %s2431_s12 = sshll.u32 %s2522_s10, 4  ;;  %s2432_s12 = int_to_ptr.vmem [resolvable:$false] %s2431_s12 }
  0x6d   : > { %s2433_s29 = scalar_lea.vmem %s2432_s12, 8192  ;;  %p2434_p12 = scmp.lt.s32.totalorder %s2720_s13, %s2432_s12 }
  0x6e   : > { %p2429_p3 = pnand %p2427_p10, %p2413_p9  ;;  %p2435_p1 = scmp.lt.s32.totalorder %s2433_s29, %s2426_s28 }
  0x70   : > { %p2430_p7 = pneg %p2429_p3  ;;  %p2436_p2 = por %p2435_p1, %p2434_p12 }
  0x72   : > { %p2437_p4 = pnand %p2436_p2, %p2430_p7 }
  0x74   : > { %2440 = shalt.err (!%p2437_p4)
}
  0x75   : > { %2081 = dma.hbm_to_vmem [thread:$0]  (!%p2716_p11), %s2714_s11, 4096, %s2720_s13, %s2722_s7, %s2520_s19, %s2520_s19, %s2521_s24  }
  0x76   : > { %p3092_p9 = scmp.ne.s32.totalorder %s3086_s27, 0 }
  0x77   : > { %s2756_s16 = sand.u32 (!%p3092_p9), 1, %s2507_s21   ;;  %p3093_p0 = scmp.ne.s32.totalorder (!%p3092_p9), %s3084_s25, 0 }
  0x78   : > { %240 = sbr.rel (%p3092_p9) target bundleno = 708 (0x2c4), region = 40  ;;  %s1901_s30 = sshll.u32 (!%p3092_p9), %s2756_s16, 8 }
  0x79   : > { %s243_s6 = scalar_lea.sflag (!%p3092_p9), [#allocation4], %s2756_s16  ;;  %s2760_s9 = scalar_lea.vmem (!%p3092_p9), [#allocation3], %s1901_s30 }
  0x7f   : > { %2486 = dma.done.wait (%p3093_p0), %s243_s6, 4096  }
  0x80   : > { %2488 = vsyncadd (%p3093_p0), %s243_s6, 4294963200  ;;  %p3094_p11 = scmp.eq.s32.totalorder %s2578_s4, 0 }
  0x82   : > { %2490 = dma.done.wait (%p3094_p11), [#allocation7], 16448   ;;  %p3095_p8 = pmov %p3094_p11 }
  0x84   : > { %2492 = vsyncadd (%p3095_p8), [#allocation7], 4294950848  ;;  %p3096_p13 = pmov %p3095_p8 }
  0x85   : > { %p3097_p6 = pmov %p3095_p8 }
  0x86   : > { %2494 = dma.done.wait (%p3096_p13), [#allocation10], 64  }
  0x87   : > { %2496 = vsyncadd (%p3097_p6), [#allocation10], 4294967232  ;;  %v2131_v0 = vld [vmem:[#allocation6 + $0x4] ss:$16 sps:$4 sm:$0xff]   ;;  %v2133_v1 = vld [vmem:[#allocation6 + $0xc] ss:$16 sps:$4 sm:$0xff]  }
  0x88   : > { %1567 = vmatprep.subr.bf16.mxu0 %v2131_v0  ;;  %v2135_v2 = vld [vmem:[#allocation6] ss:$16 sps:$4 sm:$0xff]   ;;  %v2136_v3 = vld [vmem:[#allocation6 + $0x8] ss:$16 sps:$4 sm:$0xff]   ;;  %1649 = vmatprep.subr.bf16.mxu1 %v2133_v1  ;;  %v2137_v4 = vld [vmem:[#allocation6 + $0x24] ss:$16 sps:$4 sm:$0xff]  }
  0x89   : > { %1568 = vmatpush1.bf16.msra.mxu0 %v2135_v2  ;;  %1650 = vmatpush1.bf16.msra.mxu1 %v2136_v3  ;;  %v2139_v5 = vld [vmem:[#allocation6 + $0x2c] ss:$16 sps:$4 sm:$0xff]   ;;  %v2141_v6 = vld [vmem:[#allocation6 + $0x20] ss:$16 sps:$4 sm:$0xff]   ;;  %v2142_v7 = vld [vmem:[#allocation6 + $0x28] ss:$16 sps:$4 sm:$0xff]  }
  0x8a   : > { %1569 = vmatprep.subr.bf16.mxu0 %v2137_v4  ;;  %1651 = vmatprep.subr.bf16.mxu1 %v2139_v5  ;;  %v2143_v8 = vld [vmem:[#allocation6 + $0x44] ss:$16 sps:$4 sm:$0xff]   ;;  %v2145_v9 = vld [vmem:[#allocation6 + $0x4c] ss:$16 sps:$4 sm:$0xff]   ;;  %v2147_v10 = vld [vmem:[#allocation6 + $0x40] ss:$16 sps:$4 sm:$0xff]  }
  0x8b   : > { %v2148_v11 = vld [vmem:[#allocation6 + $0x48] ss:$16 sps:$4 sm:$0xff]   ;;  %v2149_v12 = vld [vmem:[#allocation6 + $0x64] ss:$16 sps:$4 sm:$0xff]   ;;  %v2151_v13 = vld [vmem:[#allocation6 + $0x6c] ss:$16 sps:$4 sm:$0xff]  }
  0x8c   : > { %v2153_v14 = vld [vmem:[#allocation6 + $0x60] ss:$16 sps:$4 sm:$0xff]   ;;  %v2154_v15 = vld [vmem:[#allocation6 + $0x68] ss:$16 sps:$4 sm:$0xff]   ;;  %v2155_v16 = vld [vmem:[#allocation6 + $0x84] ss:$16 sps:$4 sm:$0xff]  }
  0x8d   : > { %1570 = vmatpush1.bf16.msra.mxu0 %v2141_v6  ;;  %1652 = vmatpush1.bf16.msra.mxu1 %v2142_v7  ;;  %v2157_v17 = vld [vmem:[#allocation6 + $0x8c] ss:$16 sps:$4 sm:$0xff]   ;;  %v2159_v18 = vld [vmem:[#allocation6 + $0x80] ss:$16 sps:$4 sm:$0xff]   ;;  %v2160_v19 = vld [vmem:[#allocation6 + $0x88] ss:$16 sps:$4 sm:$0xff]  }
  0x8e   : > { %1571 = vmatprep.subr.bf16.mxu0 %v2143_v8  ;;  %1653 = vmatprep.subr.bf16.mxu1 %v2145_v9  ;;  %v2161_v20 = vld [vmem:[#allocation6 + $0xa4] ss:$16 sps:$4 sm:$0xff]   ;;  %v2163_v21 = vld [vmem:[#allocation6 + $0xac] ss:$16 sps:$4 sm:$0xff]   ;;  %v2165_v22 = vld [vmem:[#allocation6 + $0xa0] ss:$16 sps:$4 sm:$0xff]  }
  0x8f   : > { %v2166_v23 = vld [vmem:[#allocation6 + $0xa8] ss:$16 sps:$4 sm:$0xff]   ;;  %v2167_v24 = vld [vmem:[#allocation6 + $0xc4] ss:$16 sps:$4 sm:$0xff]   ;;  %v2169_v25 = vld [vmem:[#allocation6 + $0xcc] ss:$16 sps:$4 sm:$0xff]  }
  0x90   : > { %v2171_v26 = vld [vmem:[#allocation6 + $0xc0] ss:$16 sps:$4 sm:$0xff]   ;;  %v2172_v27 = vld [vmem:[#allocation6 + $0xc8] ss:$16 sps:$4 sm:$0xff]   ;;  %v2173_v28 = vld [vmem:[#allocation6 + $0xe4] ss:$16 sps:$4 sm:$0xff]  }
  0x91   : > { %1572 = vmatpush1.bf16.msra.mxu0 %v2147_v10  ;;  %1654 = vmatpush1.bf16.msra.mxu1 %v2148_v11  ;;  %v2175_v29 = vld [vmem:[#allocation6 + $0xec] ss:$16 sps:$4 sm:$0xff]   ;;  %v2177_v30 = vld [vmem:[#allocation6 + $0xe0] ss:$16 sps:$4 sm:$0xff]   ;;  %v2178_v31 = vld [vmem:[#allocation6 + $0xe8] ss:$16 sps:$4 sm:$0xff]  }
  0x92   : > { %1573 = vmatprep.subr.bf16.mxu0 %v2149_v12  ;;  %1655 = vmatprep.subr.bf16.mxu1 %v2151_v13  ;;  %v2179_v32 = vld [vmem:[#allocation6 + $0x104] ss:$16 sps:$4 sm:$0xff]   ;;  %v2181_v33 = vld [vmem:[#allocation6 + $0x10c] ss:$16 sps:$4 sm:$0xff]   ;;  %v2183_v34 = vld [vmem:[#allocation6 + $0x100] ss:$16 sps:$4 sm:$0xff]  }
  0x93   : > { %v2184_v35 = vld [vmem:[#allocation6 + $0x108] ss:$16 sps:$4 sm:$0xff]   ;;  %v2185_v36 = vld [vmem:[#allocation6 + $0x124] ss:$16 sps:$4 sm:$0xff]   ;;  %v2187_v37 = vld [vmem:[#allocation6 + $0x12c] ss:$16 sps:$4 sm:$0xff]  }
  0x94   : > { %v2189_v38 = vld [vmem:[#allocation6 + $0x120] ss:$16 sps:$4 sm:$0xff]   ;;  %v2190_v39 = vld [vmem:[#allocation6 + $0x128] ss:$16 sps:$4 sm:$0xff]   ;;  %v2191_v40 = vld [vmem:[#allocation6 + $0x144] ss:$16 sps:$4 sm:$0xff]  }
  0x95   : > { %1574 = vmatpush1.bf16.msra.mxu0 %v2153_v14  ;;  %1656 = vmatpush1.bf16.msra.mxu1 %v2154_v15  ;;  %v2193_v41 = vld [vmem:[#allocation6 + $0x14c] ss:$16 sps:$4 sm:$0xff]   ;;  %v2195_v42 = vld [vmem:[#allocation6 + $0x140] ss:$16 sps:$4 sm:$0xff]   ;;  %v2196_v43 = vld [vmem:[#allocation6 + $0x148] ss:$16 sps:$4 sm:$0xff]  }
  0x96   : > { %1575 = vmatprep.subr.bf16.mxu0 %v2155_v16  ;;  %1657 = vmatprep.subr.bf16.mxu1 %v2157_v17  ;;  %v2197_v44 = vld [vmem:[#allocation6 + $0x164] ss:$16 sps:$4 sm:$0xff]   ;;  %v2199_v45 = vld [vmem:[#allocation6 + $0x16c] ss:$16 sps:$4 sm:$0xff]   ;;  %v2201_v46 = vld [vmem:[#allocation6 + $0x160] ss:$16 sps:$4 sm:$0xff]  }
  0x97   : > { %v2202_v47 = vld [vmem:[#allocation6 + $0x168] ss:$16 sps:$4 sm:$0xff]   ;;  %v2775_v48 = vld [vmem:[%s2760_s9] sm:$0xff]  ;;  %v2205_v50 = vld [vmem:[#allocation6 + $0x18c] ss:$16 sps:$4 sm:$0xff]   ;;  %vm884_vm0 = vcmask 1041409  }
  0x98   : > { %v2203_v49 = vld [vmem:[#allocation6 + $0x184] ss:$16 sps:$4 sm:$0xff]   ;;  %v318_v54 = vunpack.c.l.bf16 %v2775_v48  ;;  %v319_v58 = vunpack.c.h.bf16 %v2775_v48  ;;  %v2207_v5 = vld [vmem:[#allocation6 + $0x180] ss:$16 sps:$4 sm:$0xff]   ;;  %v2208_v6 = vld [vmem:[#allocation6 + $0x188] ss:$16 sps:$4 sm:$0xff]  }
  0x99   : > { %1576 = vmatpush1.bf16.msra.mxu0 %v2159_v18  ;;  %1658 = vmatpush1.bf16.msra.mxu1 %v2160_v19  ;;  %v2778_v51 = vld [vmem:[%s2760_s9 + $0x10] sm:$0xff]  ;;  %v2781_v52 = vld [vmem:[%s2760_s9 + $0x20] sm:$0xff]  ;;  %vm886_vm1 = vcmask 1042434   ;;  %vm888_vm2 = vcmask 1043459   ;;  %vm890_vm3 = vcmask 1044484   ;;  %vm892_vm4 = vcmask 1045509  }
  0x9a   : > { %1577 = vmatprep.subr.bf16.mxu0 %v2161_v20  ;;  %1659 = vmatprep.subr.bf16.mxu1 %v2163_v21  ;;  %v2784_v53 = vld [vmem:[%s2760_s9 + $0x30] sm:$0xff]  ;;  %v2788_v55 = vld [vmem:[%s2760_s9 + $0x40] sm:$0xff]  ;;  %v322_v59 = vunpack.c.l.bf16 %v2778_v51  ;;  %v323_v60 = vunpack.c.h.bf16 %v2778_v51  ;;  %v326_v61 = vunpack.c.l.bf16 %v2781_v52  ;;  %v327_v1 = vunpack.c.h.bf16 %v2781_v52  ;;  %s1766_s25 = sld [smem:[#allocation2]]  ;;  %s1905_s27 = sshll.u32 %s2756_s16, 3 }
  0x9b   : > { %v2791_v56 = vld [vmem:[%s2760_s9 + $0x50] sm:$0xff]  ;;  %v2794_v57 = vld [vmem:[%s2760_s9 + $0x60] sm:$0xff]  ;;  %v330_v2 = vunpack.c.l.bf16 %v2784_v53  ;;  %v331_v3 = vunpack.c.h.bf16 %v2784_v53  ;;  %v334_v4 = vunpack.c.l.bf16 %v2788_v55  ;;  %v335_v10 = vunpack.c.h.bf16 %v2788_v55  ;;  %s2035_s19 = sshll.u32 %s2578_s4, 7  ;;  %s284_s24 = scalar_lea.vmem [#allocation11], %s1905_s27 }
  0x9c   : > { %v2801_v62 = vld [vmem:[%s2760_s9 + $0x70] sm:$0xff]  ;;  %v2804_v63 = vld [vmem:[%s2760_s9 + $0x80] sm:$0xff]  ;;  %v338_v11 = vunpack.c.l.bf16 %v2791_v56  ;;  %v339_v12 = vunpack.c.h.bf16 %v2791_v56  ;;  %v342_v13 = vunpack.c.l.bf16 %v2794_v57  ;;  %v343_v17 = vunpack.c.h.bf16 %v2794_v57  ;;  %s1791_s11 = sshll.u32 %s284_s24, 4  ;;  %s3031_s7 = scalar_lea.hbm %s3080_s5, %s2035_s19  ;;  %s3033_s11 = int_to_ptr.vmem [resolvable:$true] %s1791_s11 }
  0x9d   : > { %1578 = vmatpush1.bf16.msra.mxu0 %v2165_v22  ;;  %1660 = vmatpush1.bf16.msra.mxu1 %v2166_v23  ;;  %v2807_v0 = vld [vmem:[%s2760_s9 + $0x90] sm:$0xff]  ;;  %v2814_v7 = vld [vmem:[%s2760_s9 + $0xa0] sm:$0xff]  ;;  %v346_v18 = vunpack.c.l.bf16 %v2801_v62  ;;  %v347_v19 = vunpack.c.h.bf16 %v2801_v62  ;;  %v350_v20 = vunpack.c.l.bf16 %v2804_v63  ;;  %v351_v22 = vunpack.c.h.bf16 %v2804_v63  ;;  %s1778_s8 = scalar_lea.sflag [#allocation5], %s2756_s16  ;;  %s2441_s28 = scalar_lea.vmem %s3033_s11, 128 }
  0x9e   : > { %1579 = vmatprep.subr.bf16.mxu0 %v2167_v24  ;;  %1661 = vmatprep.subr.bf16.mxu1 %v2169_v25  ;;  %v2817_v8 = vld [vmem:[%s2760_s9 + $0xb0] sm:$0xff]  ;;  %v2820_v9 = vld [vmem:[%s2760_s9 + $0xc0] sm:$0xff]  ;;  %v354_v23 = vunpack.c.l.bf16 %v2807_v0  ;;  %v355_v24 = vunpack.c.h.bf16 %v2807_v0  ;;  %v358_v25 = vunpack.c.l.bf16 %v2814_v7  ;;  %vm894_vm5 = vcmask 1046534   ;;  %p2442_p10 = scmp.ne.s32.totalorder %s3033_s11, %s2441_s28  ;;  %s2523_s4 = smov [#allocation11]  }
  0x9f   : > { %v2209_v14 = vld [vmem:[#allocation6 + $0x1a4] ss:$16 sps:$4 sm:$0xff]   ;;  %vm896_vm6 = vcmask 1047559   ;;  %v466_v48 = vadd.f32 %v346_v18, %v342_v13  ;;  %v3098_v55 = vunpack.c.l.bf16 %v2817_v8  ;;  %vm1775_vm7 = vcmask 7168   ;;  %s2445_s10 = sshll.u32 %s2523_s4, 4  ;;  %s2446_s10 = int_to_ptr.vmem [resolvable:$false] %s2445_s10 }
  0xa0   : > { %v2827_v15 = vld [vmem:[%s2760_s9 + $0xd0] sm:$0xff]  ;;  %v2830_v16 = vld [vmem:[%s2760_s9 + $0xe0] sm:$0xff]  ;;  %v494_v51 = vadd.f32 %v354_v23, %v350_v20  ;;  %p2443_p3 = pnand %p2442_p10, %p2705_p5  ;;  %s2447_s12 = scalar_lea.vmem %s2446_s10, 256 }
  0xa1   : > { %1580 = vmatpush1.bf16.msra.mxu0 %v2171_v26  ;;  %1662 = vmatpush1.bf16.msra.mxu1 %v2172_v27  ;;  %v2837_v21 = vld [vmem:[%s2760_s9 + $0xf0] sm:$0xff]  ;;  %v2211_v26 = vld [vmem:[#allocation6 + $0x1ac] ss:$16 sps:$4 sm:$0xff]   ;;  %v359_v27 = vunpack.c.h.bf16 %v2814_v7  ;;  %v522_v56 = vadd.f32 %v3098_v55, %v358_v25  ;;  %p2448_p12 = scmp.lt.s32.totalorder %s3033_s11, %s2446_s10  ;;  %p2449_p1 = scmp.lt.s32.totalorder %s2447_s12, %s2441_s28 }
  0xa2   : > { %1581 = vmatprep.subr.bf16.mxu0 %v2173_v28  ;;  %1663 = vmatprep.subr.bf16.mxu1 %v2175_v29  ;;  %v363_v29 = vunpack.c.h.bf16 %v2817_v8  ;;  %v495_v62 = vrot.slane %v494_v51, 4  ;;  %p2444_p7 = pneg %p2443_p3 }
  0xa3   : > { %v523_v0 = vrot.slane %v522_v56, 4  ;;  %p2450_p2 = por %p2449_p1, %p2448_p12 }
  0xa4   : > { %v496_v20 = vadd.f32 %v495_v62, %v494_v51 }
  0xa5   : > { %1582 = vmatpush1.bf16.msra.mxu0 %v2177_v30  ;;  %1664 = vmatpush1.bf16.msra.mxu1 %v2178_v31  ;;  %v367_v30 = vunpack.c.h.bf16 %v2820_v9  ;;  %v524_v8 = vadd.f32 %v523_v0, %v522_v56  ;;  %p2451_p4 = pnand %p2450_p2, %p2444_p7 }
  0xa6   : > { %1583 = vmatprep.subr.bf16.mxu0 %v2179_v32  ;;  %1665 = vmatprep.subr.bf16.mxu1 %v2181_v33  ;;  %v371_v33 = vunpack.c.h.bf16 %v2827_v15 }
  0xa8   : > { %v557_v32 = vadd.f32 %v371_v33, %v367_v30 }
  0xa9   : > { %1584 = vmatpush1.bf16.msra.mxu0 %v2183_v34  ;;  %1666 = vmatpush1.bf16.msra.mxu1 %v2184_v35  ;;  %v375_v34 = vunpack.c.h.bf16 %v2830_v16  ;;  %v2213_v35 = vld [vmem:[#allocation6 + $0x1a0] ss:$16 sps:$4 sm:$0xff]  }
  0xaa   : > { %1585 = vmatprep.subr.bf16.mxu0 %v2185_v36  ;;  %1667 = vmatprep.subr.bf16.mxu1 %v2187_v37  ;;  %v2214_v36 = vld [vmem:[#allocation6 + $0x1a8] ss:$16 sps:$4 sm:$0xff]  }
  0xad   : > { %1586 = vmatpush1.bf16.msra.mxu0 %v2189_v38  ;;  %1668 = vmatpush1.bf16.msra.mxu1 %v2190_v39  ;;  %v379_v38 = vunpack.c.h.bf16 %v2837_v21  ;;  %v389_v39 = vadd.f32 %v323_v60, %v319_v58 }
  0xae   : > { %1587 = vmatprep.subr.bf16.mxu0 %v2191_v40  ;;  %1669 = vmatprep.subr.bf16.mxu1 %v2193_v41  ;;  %v417_v40 = vadd.f32 %v331_v3, %v327_v1  ;;  %v2215_v41 = vld [vmem:[#allocation6 + $0x1c4] ss:$16 sps:$4 sm:$0xff]  }
  0xaf   : > { %v585_v58 = vadd.f32 %v379_v38, %v375_v34 }
  0xb1   : > { %1588 = vmatpush1.bf16.msra.mxu0 %v2195_v42  ;;  %1670 = vmatpush1.bf16.msra.mxu1 %v2196_v43  ;;  %v378_v42 = vunpack.c.l.bf16 %v2837_v21  ;;  %v445_v43 = vadd.f32 %v339_v12, %v335_v10  ;;  %v2220_v10 = vld [vmem:[#allocation6 + $0x1c8] ss:$16 sps:$4 sm:$0xff]  }
  0xb2   : > { %1589 = vmatprep.subr.bf16.mxu0 %v2197_v44  ;;  %1671 = vmatprep.subr.bf16.mxu1 %v2199_v45  ;;  %v473_v44 = vadd.f32 %v347_v19, %v343_v17  ;;  %v501_v45 = vadd.f32 %v355_v24, %v351_v22  ;;  %v586_v19 = vrot.slane %v585_v58, 4  ;;  %v2221_v22 = vld [vmem:[#allocation6 + $0x1e4] ss:$16 sps:$4 sm:$0xff]   ;;  %v2223_v24 = vld [vmem:[#allocation6 + $0x1ec] ss:$16 sps:$4 sm:$0xff]  }
  0xb3   : > { %v446_v37 = vrot.slane %v445_v43, 4 }
  0xb4   : > { %v474_v31 = vrot.slane %v473_v44, 4  ;;  %v502_v28 = vrot.slane %v501_v45, 4 }
  0xb5   : > { %1590 = vmatpush1.bf16.msra.mxu0 %v2201_v46  ;;  %1672 = vmatpush1.bf16.msra.mxu1 %v2202_v47  ;;  %v2217_v46 = vld [vmem:[#allocation6 + $0x1cc] ss:$16 sps:$4 sm:$0xff]   ;;  %v390_v47 = vrot.slane %v389_v39, 4  ;;  %v447_v12 = vadd.f32 %v446_v37, %v445_v43 }
  0xb6   : > { %1591 = vmatprep.subr.bf16.mxu0 %v2203_v49  ;;  %1673 = vmatprep.subr.bf16.mxu1 %v2205_v50  ;;  %v418_v49 = vrot.slane %v417_v40, 4  ;;  %v529_v50 = vadd.f32 %v363_v29, %v359_v27  ;;  %v503_v17 = vadd.f32 %v502_v28, %v501_v45  ;;  %v2226_v28 = vld [vmem:[#allocation6 + $0x1e8] ss:$16 sps:$4 sm:$0xff]   ;;  %v2229_v45 = vld [vmem:[#allocation6 + $0x204] ss:$16 sps:$4 sm:$0xff]  }
  0xb7   : > { %v391_v60 = vadd.f32 %v390_v47, %v389_v39  ;;  %v448_v33 = vrot.slane %v447_v12, 2  ;;  %v587_v39 = vadd.f32 %v586_v19, %v585_v58  ;;  %v2232_v58 = vld [vmem:[#allocation6 + $0x20c] ss:$16 sps:$4 sm:$0xff]  }
  0xb8   : > { %v419_v1 = vadd.f32 %v418_v49, %v417_v40  ;;  %v530_v3 = vrot.slane %v529_v50, 4  ;;  %v504_v38 = vrot.slane %v503_v17, 2 }
  0xb9   : > { %1592 = vmatpush1.bf16.msra.mxu0 %v2207_v5  ;;  %1674 = vmatpush1.bf16.msra.mxu1 %v2208_v6  ;;  %v558_v5 = vrot.slane %v557_v32, 4  ;;  %v2219_v6 = vld [vmem:[#allocation6 + $0x1c0] ss:$16 sps:$4 sm:$0xff]  }
  0xba   : > { %1593 = vmatprep.subr.bf16.mxu0 %v2209_v14  ;;  %1675 = vmatprep.subr.bf16.mxu1 %v2211_v26  ;;  %v475_v14 = vadd.f32 %v474_v31, %v473_v44  ;;  %v392_v26 = vrot.slane %v391_v60, 2  ;;  %v420_v27 = vrot.slane %v419_v1, 2  ;;  %v531_v29 = vadd.f32 %v530_v3, %v529_v50 }
  0xbb   : > { %v559_v30 = vadd.f32 %v558_v5, %v557_v32  ;;  %v449_v31 = vadd.f32 %v448_v33, %v447_v12  ;;  %v505_v43 = vadd.f32 %v504_v38, %v503_v17  ;;  %v588_v44 = vrot.slane %v587_v39, 2 }
  0xbc   : > { %v476_v34 = vrot.slane %v475_v14, 2  ;;  %v421_v40 = vadd.f32 %v420_v27, %v419_v1  ;;  %v532_v47 = vrot.slane %v531_v29, 2 }
  0xbd   : > { %1594 = vmatpush1.bf16.msra.mxu0 %v2213_v35  ;;  %1676 = vmatpush1.bf16.msra.mxu1 %v2214_v36  ;;  %v2225_v35 = vld [vmem:[#allocation6 + $0x1e0] ss:$16 sps:$4 sm:$0xff]   ;;  %v393_v36 = vadd.f32 %v392_v26, %v391_v60  ;;  %v560_v37 = vrot.slane %v559_v30, 2  ;;  %v450_v60 = vrot.slane %v449_v31, 1  ;;  %v506_v3 = vrot.slane %v505_v43, 1 }
  0xbe   : > { %1595 = vmatprep.subr.bf16.mxu0 %v2215_v41  ;;  %1677 = vmatprep.subr.bf16.mxu1 %v2217_v46  ;;  %v477_v41 = vadd.f32 %v476_v34, %v475_v14  ;;  %v422_v46 = vrot.slane %v421_v40, 1  ;;  %v533_v49 = vadd.f32 %v532_v47, %v531_v29  ;;  %v589_v5 = vadd.f32 %v588_v44, %v587_v39 }
  0xbf   : > { %v394_v32 = vrot.slane %v393_v36, 1  ;;  %v561_v50 = vadd.f32 %v560_v37, %v559_v30  ;;  %v451_v17 = vadd.f32 %v450_v60, %v449_v31 }
  0xc0   : > { %v478_v1 = vrot.slane %v477_v41, 1  ;;  %v534_v12 = vrot.slane %v533_v49, 1 }
  0xc1   : > { %1596 = vmatpush1.bf16.msra.mxu0 %v2219_v6  ;;  %1678 = vmatpush1.bf16.msra.mxu1 %v2220_v10  ;;  %v395_v6 = vadd.f32 %v394_v32, %v393_v36  ;;  %v423_v10 = vadd.f32 %v422_v46, %v421_v40  ;;  %v562_v14 = vrot.slane %v561_v50, 1  ;;  %v615_v34 = vmul.f32 0.0625, %v451_v17 }
  0xc2   : > { %1597 = vmatprep.subr.bf16.mxu0 %v2221_v22  ;;  %1679 = vmatprep.subr.bf16.mxu1 %v2223_v24  ;;  %v479_v19 = vadd.f32 %v478_v1, %v477_v41  ;;  %v507_v22 = vadd.f32 %v506_v3, %v505_v43  ;;  %v590_v24 = vrot.slane %v589_v5, 1  ;;  %v535_v26 = vadd.f32 %v534_v12, %v533_v49 }
  0xc3   : > { %v563_v27 = vadd.f32 %v562_v14, %v561_v50  ;;  %v607_v29 = vmul.f32 0.0625, %v395_v6  ;;  %v611_v30 = vmul.f32 0.0625, %v423_v10  ;;  %v410_v12 = vadd.f32 %v330_v2, %v326_v61 }
  0xc4   : > { %v591_v33 = vadd.f32 %v590_v24, %v589_v5  ;;  %v619_v38 = vmul.f32 0.0625, %v479_v19  ;;  %v623_v39 = vmul.f32 0.0625, %v507_v22  ;;  %v627_v36 = vmul.f32 0.0625, %v535_v26 }
  0xc5   : > { %1598 = vmatpush1.bf16.msra.mxu0 %v2225_v35  ;;  %1680 = vmatpush1.bf16.msra.mxu1 %v2226_v28  ;;  %v631_v35 = vmul.f32 0.0625, %v563_v27  ;;  %v639_v40 = vpack.c.bf16 %v607_v29, %v607_v29  ;;  %v643_v47 = vpack.c.bf16 %v611_v30, %v611_v30  ;;  %v647_v28 = vpack.c.bf16 %v615_v34, %v615_v34 }
  0xc6   : > { %1608 = vmatprep.subr.bf16.mxu0 %v2229_v45  ;;  %1690 = vmatprep.subr.bf16.mxu1 %v2232_v58  ;;  %v635_v37 = vmul.f32 0.0625, %v591_v33  ;;  %v651_v31 = vpack.c.bf16 %v619_v38, %v619_v38  ;;  %v655_v41 = vpack.c.bf16 %v623_v39, %v623_v39  ;;  %v659_v43 = vpack.c.bf16 %v627_v36, %v627_v36 }
  0xc7   : > { %v663_v44 = vpack.c.bf16 %v631_v35, %v631_v35  ;;  %v853_v32 = vunpack.c.l.b16 %v639_v40  ;;  %v857_v46 = vunpack.c.l.b16 %v643_v47  ;;  %v861_v45 = vunpack.c.l.b16 %v647_v28 }
  0xc8   : > { %v667_v49 = vpack.c.bf16 %v635_v37, %v635_v37  ;;  %v865_v50 = vunpack.c.l.b16 %v651_v31  ;;  %v869_v58 = vunpack.c.l.b16 %v655_v41  ;;  %v873_v60 = vunpack.c.l.b16 %v659_v43 }
  0xc9   : > { %v877_v1 = vunpack.c.l.b16 %v663_v44  ;;  %v898_v3 = vsel %vm884_vm0, %v857_v46, %v853_v32  ;;  %v382_v5 = vadd.f32 %v322_v59, %v318_v54  ;;  %v438_v14 = vadd.f32 %v338_v11, %v334_v4 }
  0xca   : > { %v881_v6 = vunpack.c.l.b16 %v667_v49  ;;  %v899_v10 = vsel %vm886_vm1, %v861_v45, %v898_v3  ;;  %v411_v53 = vrot.slane %v410_v12, 4  ;;  %v467_v61 = vrot.slane %v466_v48, 4 }
  0xcb   : > { %v900_v17 = vsel %vm888_vm2, %v865_v50, %v899_v10  ;;  %v383_v19 = vrot.slane %v382_v5, 4  ;;  %v439_v54 = vrot.slane %v438_v14, 4  ;;  %v497_v26 = vrot.slane %v496_v20, 2 }
  0xcc   : > { %v901_v52 = vsel %vm890_vm3, %v869_v58, %v900_v17  ;;  %v412_v63 = vadd.f32 %v411_v53, %v410_v12  ;;  %v468_v18 = vadd.f32 %v467_v61, %v466_v48  ;;  %v3099_v27 = vunpack.c.l.bf16 %v2820_v9 }
  0xcd   : > { %v902_v59 = vsel %vm892_vm4, %v873_v60, %v901_v52  ;;  %v384_v57 = vadd.f32 %v383_v19, %v382_v5  ;;  %v440_v4 = vadd.f32 %v439_v54, %v438_v14  ;;  %v3100_v29 = vunpack.c.l.bf16 %v2827_v15 }
  0xce   : > { %v903_v2 = vsel %vm894_vm5, %v877_v1, %v902_v59  ;;  %v413_v7 = vrot.slane %v412_v63, 2  ;;  %v469_v24 = vrot.slane %v468_v18, 2  ;;  %v525_v38 = vrot.slane %v524_v8, 2 }
  0xcf   : > { %v904_v11 = vsel %vm896_vm6, %v881_v6, %v903_v2  ;;  %v385_v13 = vrot.slane %v384_v57, 2  ;;  %v441_v22 = vrot.slane %v440_v4, 2  ;;  %v550_v30 = vadd.f32 %v3100_v29, %v3099_v27  ;;  %v2911_v29 = vld [vmem:[%s2760_s9 + $0x48] sm:$0xff] }
  0xd0   : > { %v920_v23 = vpack.c.b16 %v904_v11, %v904_v11  ;;  %v414_v33 = vadd.f32 %v413_v7, %v412_v63  ;;  %v3101_v39 = vunpack.c.l.bf16 %v2830_v16  ;;  %v470_v40 = vadd.f32 %v469_v24, %v468_v18 }
  0xd1   : > { %v386_v25 = vadd.f32 %v385_v13, %v384_v57  ;;  %v442_v34 = vadd.f32 %v441_v22, %v440_v4  ;;  %v498_v47 = vadd.f32 %v497_v26, %v496_v20  ;;  %v551_v37 = vrot.slane %v550_v30, 4  ;;  %v2896_v20 = vld [vmem:[%s2760_s9 + $0x8] sm:$0xff] }
  0xd2   : > { %1599 = vmatprep.mubr.bf16.mxu0 %v920_v23  ;;  %1681 = vmatprep.mubr.bf16.mxu1 %v920_v23  ;;  %v578_v36 = vadd.f32 %v378_v42, %v3101_v39  ;;  %v415_v28 = vrot.slane %v414_v33, 1  ;;  %v526_v9 = vadd.f32 %v525_v38, %v524_v8  ;;  %v471_v43 = vrot.slane %v470_v40, 1  ;;  %v2899_v23 = vld [vmem:[%s2760_s9 + $0x18] sm:$0xff]  ;;  %v2903_v8 = vld [vmem:[%s2760_s9 + $0x28] sm:$0xff] }
  0xd3   : > { %v387_v35 = vrot.slane %v386_v25, 1  ;;  %v443_v31 = vrot.slane %v442_v34, 1  ;;  %v499_v44 = vrot.slane %v498_v47, 1  ;;  %v552_v32 = vadd.f32 %v551_v37, %v550_v30  ;;  %v2914_v30 = vld [vmem:[%s2760_s9 + $0x58] sm:$0xff] }
  0xd4   : > { %v579_v41 = vrot.slane %v578_v36, 4  ;;  %v416_v46 = vadd.f32 %v415_v28, %v414_v33  ;;  %v527_v45 = vrot.slane %v526_v9, 1  ;;  %v472_v16 = vadd.f32 %v471_v43, %v470_v40  ;;  %v2925_v37 = vld [vmem:[%s2760_s9 + $0x78] sm:$0xff]  ;;  %v2928_v28 = vld [vmem:[%s2760_s9 + $0x88] sm:$0xff] }
  0xd5   : > { %v388_v15 = vadd.f32 %v387_v35, %v386_v25  ;;  %v444_v49 = vadd.f32 %v443_v31, %v442_v34  ;;  %v500_v58 = vadd.f32 %v499_v44, %v498_v47  ;;  %v553_v21 = vrot.slane %v552_v32, 2  ;;  %v2906_v25 = vld [vmem:[%s2760_s9 + $0x38] sm:$0xff] }
  0xd6   : > { %v580_v50 = vadd.f32 %v579_v41, %v578_v36  ;;  %v528_v60 = vadd.f32 %v527_v45, %v526_v9  ;;  %v610_v3 = vmul.f32 0.0625, %v416_v46  ;;  %v618_v10 = vmul.f32 0.0625, %v472_v16  ;;  %v2920_v36 = vld [vmem:[%s2760_s9 + $0x68] sm:$0xff]  ;;  %v2934_v44 = vld [vmem:[%s2760_s9 + $0x98] sm:$0xff] }
  0xd7   : > { %v606_v42 = vmul.f32 0.0625, %v388_v15  ;;  %v614_v5 = vmul.f32 0.0625, %v444_v49  ;;  %v554_v6 = vadd.f32 %v553_v21, %v552_v32  ;;  %v622_v12 = vmul.f32 0.0625, %v500_v58  ;;  %v2227_v15 = vld [vmem:[#allocation6 + $0x200] ss:$16 sps:$4 sm:$0xff]   ;;  %v2941_v16 = vld [vmem:[%s2760_s9 + $0xa8] sm:$0xff] }
  0xd8   : > { %v581_v1 = vrot.slane %v580_v50, 2  ;;  %v626_v19 = vmul.f32 0.0625, %v528_v60  ;;  %v642_v48 = vpack.c.bf16 %v610_v3, %v610_v3  ;;  %v650_v53 = vpack.c.bf16 %v618_v10, %v618_v10  ;;  %v2230_v45 = vld [vmem:[#allocation6 + $0x208] ss:$16 sps:$4 sm:$0xff]   ;;  %v2235_v3 = vld [vmem:[#allocation6 + $0x224] ss:$16 sps:$4 sm:$0xff]  }
  0xd9   : > { %v638_v14 = vpack.c.bf16 %v606_v42, %v606_v42  ;;  %v646_v51 = vpack.c.bf16 %v614_v5, %v614_v5  ;;  %v555_v52 = vrot.slane %v554_v6, 1  ;;  %v654_v54 = vpack.c.bf16 %v622_v12, %v622_v12  ;;  %v2944_v58 = vld [vmem:[%s2760_s9 + $0xb8] sm:$0xff]  ;;  %v2951_v5 = vld [vmem:[%s2760_s9 + $0xc8] sm:$0xff] }
  0xda   : > { %v582_v17 = vadd.f32 %v581_v1, %v580_v50  ;;  %v658_v59 = vpack.c.bf16 %v626_v19, %v626_v19  ;;  %v856_v57 = vunpack.c.l.b16 %v642_v48  ;;  %v864_v2 = vunpack.c.l.b16 %v650_v53  ;;  %v2238_v19 = vld [vmem:[#allocation6 + $0x22c] ss:$16 sps:$4 sm:$0xff]  }
  0xdb   : > { %v852_v55 = vunpack.c.l.b16 %v638_v14  ;;  %v860_v61 = vunpack.c.l.b16 %v646_v51  ;;  %v556_v62 = vadd.f32 %v555_v52, %v554_v6  ;;  %v868_v63 = vunpack.c.l.b16 %v654_v54  ;;  %v2954_v6 = vld [vmem:[%s2760_s9 + $0xd8] sm:$0xff]  ;;  %v2960_v48 = vld [vmem:[%s2760_s9 + $0xe8] sm:$0xff] }
  0xdc   : > { %v583_v56 = vrot.slane %v582_v17, 1  ;;  %v872_v0 = vunpack.c.l.b16 %v658_v59  ;;  %v320_v24 = vunpack.c.l.bf16 %v2896_v20  ;;  %v321_v33 = vunpack.c.h.bf16 %v2896_v20  ;;  %v2963_v51 = vld [vmem:[%s2760_s9 + $0xf8] sm:$0xff] }
  0xdd   : > { %v885_v11 = vsel %vm884_vm0, %v856_v57, %v852_v55  ;;  %v630_v13 = vmul.f32 0.0625, %v556_v62  ;;  %v324_v34 = vunpack.c.l.bf16 %v2899_v23  ;;  %v325_v35 = vunpack.c.h.bf16 %v2899_v23 }
  0xde   : > { %v584_v4 = vadd.f32 %v583_v56, %v582_v17  ;;  %v887_v18 = vsel %vm886_vm1, %v860_v61, %v885_v11  ;;  %v328_v40 = vunpack.c.l.bf16 %v2903_v8  ;;  %v329_v31 = vunpack.c.h.bf16 %v2903_v8 }
  0xdf   : > { %v889_v22 = vsel %vm888_vm2, %v864_v2, %v887_v18  ;;  %v662_v26 = vpack.c.bf16 %v630_v13, %v630_v13  ;;  %v332_v9 = vunpack.c.l.bf16 %v2906_v25  ;;  %v333_v41 = vunpack.c.h.bf16 %v2906_v25 }
  0xe0   : > { %v634_v7 = vmul.f32 0.0625, %v584_v4  ;;  %v891_v27 = vsel %vm890_vm3, %v868_v63, %v889_v22  ;;  %v336_v32 = vunpack.c.l.bf16 %v2911_v29  ;;  %v337_v46 = vunpack.c.h.bf16 %v2911_v29  ;;  %v2233_v4 = vld [vmem:[#allocation6 + $0x220] ss:$16 sps:$4 sm:$0xff]   ;;  %v2241_v22 = vld [vmem:[#allocation6 + $0x244] ss:$16 sps:$4 sm:$0xff]  }
  0xe1   : > { %v893_v39 = vsel %vm892_vm4, %v872_v0, %v891_v27  ;;  %v876_v47 = vunpack.c.l.b16 %v662_v26  ;;  %v340_v49 = vunpack.c.l.bf16 %v2914_v30  ;;  %v341_v21 = vunpack.c.h.bf16 %v2914_v30  ;;  %v2236_v0 = vld [vmem:[#allocation6 + $0x228] ss:$16 sps:$4 sm:$0xff]   ;;  %v2244_v26 = vld [vmem:[#allocation6 + $0x24c] ss:$16 sps:$4 sm:$0xff]  }
  0xe2   : > { %v666_v38 = vpack.c.bf16 %v634_v7, %v634_v7  ;;  %v344_v42 = vunpack.c.l.bf16 %v2920_v36  ;;  %v345_v60 = vunpack.c.h.bf16 %v2920_v36  ;;  %v348_v10 = vunpack.c.l.bf16 %v2925_v37  ;;  %v2269_v36 = vld [vmem:[#allocation6 + $0x2e0] ss:$16 sps:$4 sm:$0xff]  }
  0xe3   : > { %v895_v50 = vsel %vm894_vm5, %v876_v47, %v893_v39  ;;  %v349_v12 = vunpack.c.h.bf16 %v2925_v37  ;;  %v352_v14 = vunpack.c.l.bf16 %v2928_v28  ;;  %v353_v52 = vunpack.c.h.bf16 %v2928_v28 }
  0xe4   : > { %v880_v43 = vunpack.c.l.b16 %v666_v38  ;;  %v356_v53 = vunpack.c.l.bf16 %v2934_v44  ;;  %v357_v54 = vunpack.c.h.bf16 %v2934_v44  ;;  %v360_v55 = vunpack.c.l.bf16 %v2941_v16  ;;  %v2277_v44 = vld [vmem:[#allocation6 + $0x304] ss:$16 sps:$4 sm:$0xff]  }
  0xe5   : > { %v361_v56 = vunpack.c.h.bf16 %v2941_v16  ;;  %v365_v57 = vunpack.c.h.bf16 %v2944_v58  ;;  %v369_v62 = vunpack.c.h.bf16 %v2951_v5  ;;  %v373_v63 = vunpack.c.h.bf16 %v2954_v6 }
  0xe6   : > { %v897_v1 = vsel %vm896_vm6, %v880_v43, %v895_v50  ;;  %v377_v13 = vunpack.c.h.bf16 %v2960_v48  ;;  %v381_v18 = vunpack.c.h.bf16 %v2963_v51  ;;  %v403_v7 = vadd.f32 %v325_v35, %v321_v33  ;;  %v2242_v33 = vld [vmem:[#allocation6 + $0x248] ss:$16 sps:$4 sm:$0xff]  }
  0xe7   : > { %v919_v17 = vpack.c.b16 %v897_v1, %v897_v1  ;;  %v380_v27 = vunpack.c.l.bf16 %v2963_v51  ;;  %v431_v38 = vadd.f32 %v333_v41, %v329_v31  ;;  %v459_v39 = vadd.f32 %v341_v21, %v337_v46  ;;  %v2239_v1 = vld [vmem:[#allocation6 + $0x240] ss:$16 sps:$4 sm:$0xff]   ;;  %v2247_v31 = vld [vmem:[#allocation6 + $0x264] ss:$16 sps:$4 sm:$0xff]   ;;  %v2250_v41 = vld [vmem:[#allocation6 + $0x26c] ss:$16 sps:$4 sm:$0xff]  }
  0xe8   : > { %v487_v47 = vadd.f32 %v349_v12, %v345_v60  ;;  %v515_v43 = vadd.f32 %v357_v54, %v353_v52  ;;  %v571_v50 = vadd.f32 %v373_v63, %v369_v62  ;;  %v599_v61 = vadd.f32 %v381_v18, %v377_v13  ;;  %v2245_v62 = vld [vmem:[#allocation6 + $0x260] ss:$16 sps:$4 sm:$0xff]   ;;  %v2248_v18 = vld [vmem:[#allocation6 + $0x268] ss:$16 sps:$4 sm:$0xff]  }
  0xe9   : > { %1600 = vmatmul.mubr.bf16.vlgmr.msra.gmra.mrb[0].mxu0 %v919_v17  ;;  %1682 = vmatmul.mubr.bf16.vlgmr.msra.gmra.mrb[0].mxu1 %v919_v17  ;;  %v432_v17 = vrot.slane %v431_v38, 4  ;;  %v460_v11 = vrot.slane %v459_v39, 4  ;;  %v452_v20 = vadd.f32 %v340_v49, %v336_v32  ;;  %v508_v8 = vadd.f32 %v356_v53, %v352_v14  ;;  %v2272_v32 = vld [vmem:[#allocation6 + $0x2e8] ss:$16 sps:$4 sm:$0xff]  }
  0xea   : > { %1609 = vmatpush1.bf16.msra.mxu0 %v2227_v15  ;;  %1691 = vmatpush1.bf16.msra.mxu1 %v2230_v45  ;;  %v404_v15 = vrot.slane %v403_v7, 4  ;;  %v543_v45 = vadd.f32 %v365_v57, %v361_v56  ;;  %v488_v2 = vrot.slane %v487_v47, 4  ;;  %v572_v59 = vrot.slane %v571_v50, 4 }
  0xeb   : > { %1610 = vmatprep.subr.bf16.mxu0 %v2235_v3  ;;  %1692 = vmatprep.subr.bf16.mxu1 %v2238_v19  ;;  %v516_v3 = vrot.slane %v515_v43, 4  ;;  %v433_v46 = vadd.f32 %v432_v17, %v431_v38  ;;  %v461_v21 = vadd.f32 %v460_v11, %v459_v39  ;;  %v600_v12 = vrot.slane %v599_v61, 4  ;;  %v2256_v11 = vld [vmem:[#allocation6 + $0x28c] ss:$16 sps:$4 sm:$0xff]  }
  0xec   : > { %v405_v35 = vadd.f32 %v404_v15, %v403_v7  ;;  %v544_v19 = vrot.slane %v543_v45, 4  ;;  %v489_v60 = vadd.f32 %v488_v2, %v487_v47  ;;  %v573_v57 = vadd.f32 %v572_v59, %v571_v50  ;;  %v2253_v2 = vld [vmem:[#allocation6 + $0x284] ss:$16 sps:$4 sm:$0xff]  }
  0xed   : > { %v517_v54 = vadd.f32 %v516_v3, %v515_v43  ;;  %v434_v63 = vrot.slane %v433_v46, 2  ;;  %v601_v13 = vadd.f32 %v600_v12, %v599_v61  ;;  %v2251_v61 = vld [vmem:[#allocation6 + $0x280] ss:$16 sps:$4 sm:$0xff]   ;;  %v453_v29 = vrot.slane %v452_v20, 4 }
  0xee   : > { %1611 = vmatpush1.bf16.msra.mxu0 %v2233_v4  ;;  %1693 = vmatpush1.bf16.msra.mxu1 %v2236_v0  ;;  %v406_v52 = vrot.slane %v405_v35, 2  ;;  %v545_v56 = vadd.f32 %v544_v19, %v543_v45  ;;  %v462_v4 = vrot.slane %v461_v21, 2  ;;  %v490_v0 = vrot.slane %v489_v60, 2  ;;  %v2254_v19 = vld [vmem:[#allocation6 + $0x288] ss:$16 sps:$4 sm:$0xff]  }
  0xef   : > { %1612 = vmatprep.subr.bf16.mxu0 %v2241_v22  ;;  %1694 = vmatprep.subr.bf16.mxu1 %v2244_v26  ;;  %v518_v22 = vrot.slane %v517_v54, 2  ;;  %v574_v15 = vrot.slane %v573_v57, 2  ;;  %v435_v38 = vadd.f32 %v434_v63, %v433_v46  ;;  %v602_v59 = vrot.slane %v601_v13, 2  ;;  %v2259_v46 = vld [vmem:[#allocation6 + $0x2a4] ss:$16 sps:$4 sm:$0xff]  }
  0xf0   : > { %v407_v7 = vadd.f32 %v406_v52, %v405_v35  ;;  %v546_v26 = vrot.slane %v545_v56, 2  ;;  %v463_v39 = vadd.f32 %v462_v4, %v461_v21  ;;  %v491_v47 = vadd.f32 %v490_v0, %v489_v60  ;;  %v2262_v21 = vld [vmem:[#allocation6 + $0x2ac] ss:$16 sps:$4 sm:$0xff]  }
  0xf1   : > { %v519_v45 = vadd.f32 %v518_v22, %v517_v54  ;;  %v575_v17 = vadd.f32 %v574_v15, %v573_v57  ;;  %v603_v35 = vadd.f32 %v602_v59, %v601_v13  ;;  %v2257_v13 = vld [vmem:[#allocation6 + $0x2a0] ss:$16 sps:$4 sm:$0xff]   ;;  %v2260_v15 = vld [vmem:[#allocation6 + $0x2a8] ss:$16 sps:$4 sm:$0xff]   ;;  %v3102_v30 = vunpack.c.l.bf16 %v2944_v58 }
  0xf2   : > { %1613 = vmatpush1.bf16.msra.mxu0 %v2239_v1  ;;  %1695 = vmatpush1.bf16.msra.mxu1 %v2242_v33  ;;  %v408_v43 = vrot.slane %v407_v7, 1  ;;  %v547_v50 = vadd.f32 %v546_v26, %v545_v56  ;;  %v436_v1 = vrot.slane %v435_v38, 1  ;;  %v464_v33 = vrot.slane %v463_v39, 1 }
  0xf3   : > { %1614 = vmatprep.subr.bf16.mxu0 %v2247_v31  ;;  %1696 = vmatprep.subr.bf16.mxu1 %v2250_v41  ;;  %v492_v3 = vrot.slane %v491_v47, 1  ;;  %v520_v41 = vrot.slane %v519_v45, 1  ;;  %v576_v52 = vrot.slane %v575_v17, 1  ;;  %v604_v57 = vrot.slane %v603_v35, 1 }
  0xf4   : > { %v409_v31 = vadd.f32 %v408_v43, %v407_v7  ;;  %v548_v12 = vrot.slane %v547_v50, 1  ;;  %v437_v60 = vadd.f32 %v436_v1, %v435_v38  ;;  %v465_v54 = vadd.f32 %v464_v33, %v463_v39  ;;  %v2265_v38 = vld [vmem:[#allocation6 + $0x2c4] ss:$16 sps:$4 sm:$0xff]   ;;  %v2268_v39 = vld [vmem:[#allocation6 + $0x2cc] ss:$16 sps:$4 sm:$0xff]  }
  0xf5   : > { %v493_v56 = vadd.f32 %v492_v3, %v491_v47  ;;  %v521_v63 = vadd.f32 %v520_v41, %v519_v45  ;;  %v577_v0 = vadd.f32 %v576_v52, %v575_v17  ;;  %v2266_v52 = vld [vmem:[#allocation6 + $0x2c8] ss:$16 sps:$4 sm:$0xff]   ;;  %v454_v16 = vadd.f32 %v453_v29, %v452_v20 }
  0xf6   : > { %1615 = vmatpush1.bf16.msra.mxu0 %v2245_v62  ;;  %1697 = vmatpush1.bf16.msra.mxu1 %v2248_v18  ;;  %v549_v4 = vadd.f32 %v548_v12, %v547_v50  ;;  %v609_v22 = vmul.f32 0.0625, %v409_v31  ;;  %v605_v62 = vadd.f32 %v604_v57, %v603_v35  ;;  %v613_v18 = vmul.f32 0.0625, %v437_v60  ;;  %v2263_v12 = vld [vmem:[#allocation6 + $0x2c0] ss:$16 sps:$4 sm:$0xff]   ;;  %v2274_v57 = vld [vmem:[#allocation6 + $0x2ec] ss:$16 sps:$4 sm:$0xff]  }
  0xf7   : > { %1616 = vmatprep.subr.bf16.mxu0 %v2253_v2  ;;  %1698 = vmatprep.subr.bf16.mxu1 %v2256_v11  ;;  %v617_v26 = vmul.f32 0.0625, %v465_v54  ;;  %v621_v7 = vmul.f32 0.0625, %v493_v56  ;;  %v625_v2 = vmul.f32 0.0625, %v521_v63  ;;  %v633_v59 = vmul.f32 0.0625, %v577_v0  ;;  %v2271_v56 = vld [vmem:[#allocation6 + $0x2e4] ss:$16 sps:$4 sm:$0xff]  }
  0xf8   : > { %v629_v11 = vmul.f32 0.0625, %v549_v4  ;;  %v641_v43 = vpack.c.bf16 %v609_v22, %v609_v22  ;;  %v637_v47 = vmul.f32 0.0625, %v605_v62  ;;  %v645_v45 = vpack.c.bf16 %v613_v18, %v613_v18 }
  0xf9   : > { %v649_v50 = vpack.c.bf16 %v617_v26, %v617_v26  ;;  %v653_v17 = vpack.c.bf16 %v621_v7, %v621_v7  ;;  %v657_v1 = vpack.c.bf16 %v625_v2, %v625_v2  ;;  %v665_v3 = vpack.c.bf16 %v633_v59, %v633_v59  ;;  %v2275_v2 = vld [vmem:[#allocation6 + $0x300] ss:$16 sps:$4 sm:$0xff]  }
  0xfa   : > { %1617 = vmatpush1.bf16.msra.mxu0 %v2251_v61  ;;  %1699 = vmatpush1.bf16.msra.mxu1 %v2254_v19  ;;  %v661_v33 = vpack.c.bf16 %v629_v11, %v629_v11  ;;  %v855_v35 = vunpack.c.l.b16 %v641_v43  ;;  %v669_v31 = vpack.c.bf16 %v637_v47, %v637_v47  ;;  %v859_v61 = vunpack.c.l.b16 %v645_v45  ;;  %v2278_v11 = vld [vmem:[#allocation6 + $0x308] ss:$16 sps:$4 sm:$0xff]   ;;  %v2283_v47 = vld [vmem:[#allocation6 + $0x324] ss:$16 sps:$4 sm:$0xff]   ;;  %v2286_v45 = vld [vmem:[#allocation6 + $0x32c] ss:$16 sps:$4 sm:$0xff]  }
  0xfb   : > { %1618 = vmatprep.subr.bf16.mxu0 %v2259_v46  ;;  %1700 = vmatprep.subr.bf16.mxu1 %v2262_v21  ;;  %v863_v19 = vunpack.c.l.b16 %v649_v50  ;;  %v867_v41 = vunpack.c.l.b16 %v653_v17  ;;  %v871_v46 = vunpack.c.l.b16 %v657_v1  ;;  %v879_v60 = vunpack.c.l.b16 %v665_v3 }
  0xfc   : > { %v875_v21 = vunpack.c.l.b16 %v661_v33  ;;  %v396_v54 = vadd.f32 %v324_v34, %v320_v24  ;;  %v883_v63 = vunpack.c.l.b16 %v669_v31  ;;  %v912_v4 = vsel %vm884_vm0, %v859_v61, %v855_v35 }
  0xfd   : > { %v424_v0 = vadd.f32 %v332_v9, %v328_v40  ;;  %v913_v23 = vsel %vm886_vm1, %v863_v19, %v912_v4  ;;  %v480_v34 = vadd.f32 %v348_v10, %v344_v42  ;;  %v536_v9 = vadd.f32 %v3102_v30, %v360_v55  ;;  %v2280_v10 = vld [vmem:[#allocation6 + $0x30c] ss:$16 sps:$4 sm:$0xff]   ;;  %v2289_v4 = vld [vmem:[#allocation6 + $0x344] ss:$16 sps:$4 sm:$0xff]  }
  0xfe   : > { %1619 = vmatpush1.bf16.msra.mxu0 %v2257_v13  ;;  %1701 = vmatpush1.bf16.msra.mxu1 %v2260_v15  ;;  %v397_v24 = vrot.slane %v396_v54, 4  ;;  %v914_v25 = vsel %vm888_vm2, %v867_v41, %v913_v23  ;;  %v509_v42 = vrot.slane %v508_v8, 4  ;;  %v455_v7 = vrot.slane %v454_v16, 2 }
  0xff   : > { %1620 = vmatprep.subr.bf16.mxu0 %v2265_v38  ;;  %1702 = vmatprep.subr.bf16.mxu1 %v2268_v39  ;;  %v425_v40 = vrot.slane %v424_v0, 4  ;;  %v915_v37 = vsel %vm890_vm3, %v871_v46, %v914_v25  ;;  %v481_v28 = vrot.slane %v480_v34, 4  ;;  %v537_v22 = vrot.slane %v536_v9, 4  ;;  %v2287_v25 = vld [vmem:[#allocation6 + $0x340] ss:$16 sps:$4 sm:$0xff]  }
 0x100   : > { %v398_v49 = vadd.f32 %v397_v24, %v396_v54  ;;  %v916_v14 = vsel %vm892_vm4, %v875_v21, %v915_v37  ;;  %v510_v62 = vadd.f32 %v509_v42, %v508_v8  ;;  %v456_v17 = vadd.f32 %v455_v7, %v454_v16  ;;  %v2295_v42 = vld [vmem:[#allocation6 + $0x364] ss:$16 sps:$4 sm:$0xff]   ;;  %v2293_v7 = vld [vmem:[#allocation6 + $0x360] ss:$16 sps:$4 sm:$0xff]  }
 0x101   : > { %v426_v53 = vadd.f32 %v425_v40, %v424_v0  ;;  %v917_v58 = vsel %vm894_vm5, %v879_v60, %v916_v14  ;;  %v482_v13 = vadd.f32 %v481_v28, %v480_v34  ;;  %v538_v15 = vadd.f32 %v537_v22, %v536_v9  ;;  %v2292_v0 = vld [vmem:[#allocation6 + $0x34c] ss:$16 sps:$4 sm:$0xff]  }
 0x102   : > { %1621 = vmatpush1.bf16.msra.mxu0 %v2263_v12  ;;  %1703 = vmatpush1.bf16.msra.mxu1 %v2266_v52  ;;  %v399_v55 = vrot.slane %v398_v49, 2  ;;  %v918_v18 = vsel %vm896_vm6, %v883_v63, %v917_v58  ;;  %v511_v39 = vrot.slane %v510_v62, 2  ;;  %v3103_v33 = vunpack.c.l.bf16 %v2951_v5  ;;  %v2281_v52 = vld [vmem:[#allocation6 + $0x320] ss:$16 sps:$4 sm:$0xff]   ;;  %v2284_v5 = vld [vmem:[#allocation6 + $0x328] ss:$16 sps:$4 sm:$0xff]  }
 0x103   : > { %1622 = vmatprep.subr.bf16.mxu0 %v2271_v56  ;;  %1704 = vmatprep.subr.bf16.mxu1 %v2274_v57  ;;  %v427_v26 = vrot.slane %v426_v53, 2  ;;  %v922_v59 = vpack.c.b16 %v918_v18, %v918_v18  ;;  %v483_v38 = vrot.slane %v482_v13, 2  ;;  %v539_v1 = vrot.slane %v538_v15, 2 }
 0x104   : > { %v400_v43 = vadd.f32 %v399_v55, %v398_v49  ;;  %v3104_v3 = vunpack.c.l.bf16 %v2954_v6  ;;  %v512_v19 = vadd.f32 %v511_v39, %v510_v62  ;;  %v3105_v41 = vunpack.c.l.bf16 %v2960_v48 }
 0x105   : > { %v428_v50 = vadd.f32 %v427_v26, %v426_v53  ;;  %1640 = vmatprep.mubr.bf16.mxu0 %v922_v59  ;;  %1722 = vmatprep.mubr.bf16.mxu1 %v922_v59  ;;  %v484_v61 = vadd.f32 %v483_v38, %v482_v13  ;;  %v457_v21 = vrot.slane %v456_v17, 1  ;;  %v540_v60 = vadd.f32 %v539_v1, %v538_v15  ;;  %v2296_v15 = vld [vmem:[#allocation6 + $0x368] ss:$16 sps:$4 sm:$0xff]   ;;  %v2301_v59 = vld [vmem:[#allocation6 + $0x384] ss:$16 sps:$4 sm:$0xff]  }
 0x106   : > { %1623 = vmatpush1.bf16.msra.mxu0 %v2269_v36  ;;  %1705 = vmatpush1.bf16.msra.mxu1 %v2272_v32  ;;  %v564_v35 = vadd.f32 %v3104_v3, %v3103_v33  ;;  %v401_v31 = vrot.slane %v400_v43, 1  ;;  %v592_v12 = vadd.f32 %v380_v27, %v3105_v41  ;;  %v513_v57 = vrot.slane %v512_v19, 1  ;;  %v2290_v36 = vld [vmem:[#allocation6 + $0x348] ss:$16 sps:$4 sm:$0xff]   ;;  %v2299_v33 = vld [vmem:[#allocation6 + $0x380] ss:$16 sps:$4 sm:$0xff]  }
 0x107   : > { %1624 = vmatprep.subr.bf16.mxu0 %v2277_v44  ;;  %1706 = vmatprep.subr.bf16.mxu1 %v2280_v10  ;;  %v429_v46 = vrot.slane %v428_v50, 1  ;;  %v485_v56 = vrot.slane %v484_v61, 1  ;;  %v458_v20 = vadd.f32 %v457_v21, %v456_v17  ;;  %v541_v51 = vrot.slane %v540_v60, 1  ;;  %v2298_v44 = vld [vmem:[#allocation6 + $0x36c] ss:$16 sps:$4 sm:$0xff]  }
 0x108   : > { %v565_v54 = vrot.slane %v564_v35, 4  ;;  %v402_v6 = vadd.f32 %v401_v31, %v400_v43  ;;  %v593_v63 = vrot.slane %v592_v12, 4  ;;  %v514_v24 = vadd.f32 %v513_v57, %v512_v19  ;;  %v2304_v43 = vld [vmem:[#allocation6 + $0x38c] ss:$16 sps:$4 sm:$0xff]   ;;  %v2302_v3 = vld [vmem:[#allocation6 + $0x388] ss:$16 sps:$4 sm:$0xff]  }
 0x109   : > { %v430_v48 = vadd.f32 %v429_v46, %v428_v50  ;;  %v486_v23 = vadd.f32 %v485_v56, %v484_v61  ;;  %v542_v40 = vadd.f32 %v541_v51, %v540_v60  ;;  %v616_v9 = vmul.f32 0.0625, %v458_v20  ;;  %v2307_v61 = vld [vmem:[#allocation6 + $0x3a4] ss:$16 sps:$4 sm:$0xff]   ;;  %v2310_v19 = vld [vmem:[#allocation6 + $0x3ac] ss:$16 sps:$4 sm:$0xff]  }
 0x10a   : > { %1625 = vmatpush1.bf16.msra.mxu0 %v2275_v2  ;;  %1707 = vmatpush1.bf16.msra.mxu1 %v2278_v11  ;;  %v566_v27 = vadd.f32 %v565_v54, %v564_v35  ;;  %v594_v34 = vadd.f32 %v593_v63, %v592_v12  ;;  %v608_v8 = vmul.f32 0.0625, %v402_v6  ;;  %v624_v49 = vmul.f32 0.0625, %v514_v24  ;;  %v2305_v46 = vld [vmem:[#allocation6 + $0x3a0] ss:$16 sps:$4 sm:$0xff]   ;;  %v2308_v21 = vld [vmem:[#allocation6 + $0x3a8] ss:$16 sps:$4 sm:$0xff]  }
 0x10b   : > { %1626 = vmatprep.subr.bf16.mxu0 %v2283_v47  ;;  %1708 = vmatprep.subr.bf16.mxu1 %v2286_v45  ;;  %v612_v30 = vmul.f32 0.0625, %v430_v48  ;;  %v620_v37 = vmul.f32 0.0625, %v486_v23  ;;  %v648_v53 = vpack.c.bf16 %v616_v9, %v616_v9  ;;  %v628_v22 = vmul.f32 0.0625, %v542_v40  ;;  %v2313_v54 = vld [vmem:[#allocation6 + $0x3c4] ss:$16 sps:$4 sm:$0xff]  }
 0x10c   : > { %v567_v29 = vrot.slane %v566_v27, 2  ;;  %v595_v32 = vrot.slane %v594_v34, 2  ;;  %v640_v28 = vpack.c.bf16 %v608_v8, %v608_v8  ;;  %v656_v62 = vpack.c.bf16 %v624_v49, %v624_v49  ;;  %v2311_v57 = vld [vmem:[#allocation6 + $0x3c0] ss:$16 sps:$4 sm:$0xff]   ;;  %v2314_v63 = vld [vmem:[#allocation6 + $0x3c8] ss:$16 sps:$4 sm:$0xff]  }
 0x10d   : > { %v644_v14 = vpack.c.bf16 %v612_v30, %v612_v30  ;;  %v652_v58 = vpack.c.bf16 %v620_v37, %v620_v37  ;;  %v862_v26 = vunpack.c.l.b16 %v648_v53  ;;  %v660_v45 = vpack.c.bf16 %v628_v22, %v628_v22  ;;  %v2322_v48 = vld [vmem:[#allocation6 + $0x3ec] ss:$16 sps:$4 sm:$0xff]   ;;  %v2317_v51 = vld [vmem:[#allocation6 + $0x3e0] ss:$16 sps:$4 sm:$0xff]   ;;  %v1735_v37 = vld [vmem:[#allocation9] sm:$0xf] }
 0x10e   : > { %1627 = vmatpush1.bf16.msra.mxu0 %v2281_v52  ;;  %1709 = vmatpush1.bf16.msra.mxu1 %v2284_v5  ;;  %v568_v10 = vadd.f32 %v567_v29, %v566_v27  ;;  %v596_v16 = vadd.f32 %v595_v32, %v594_v34  ;;  %v854_v55 = vunpack.c.l.b16 %v640_v28  ;;  %v870_v1 = vunpack.c.l.b16 %v656_v62  ;;  %v2316_v5 = vld [vmem:[#allocation6 + $0x3cc] ss:$16 sps:$4 sm:$0xff]   ;;  %v2320_v27 = vld [vmem:[#allocation6 + $0x3e8] ss:$16 sps:$4 sm:$0xff]   ;;  %v798_v29 = vld [vmem:[#allocation8] sm:$0xf] }
 0x10f   : > { %1628 = vmatprep.subr.bf16.mxu0 %v2289_v4  ;;  %1710 = vmatprep.subr.bf16.mxu1 %v2292_v0  ;;  %v858_v18 = vunpack.c.l.b16 %v644_v14  ;;  %v866_v11 = vunpack.c.l.b16 %v652_v58  ;;  %v874_v12 = vunpack.c.l.b16 %v660_v45  ;;  %v2319_v0 = vld [vmem:[#allocation6 + $0x3e4] ss:$16 sps:$4 sm:$0xff]   ;;  %v800_v34 = vlaneseq }
 0x110   : > { %v569_v13 = vrot.slane %v568_v10, 1  ;;  %v597_v2 = vrot.slane %v596_v16, 1 }
 0x111   : > { %v905_v39 = vsel %vm884_vm0, %v858_v18, %v854_v55  ;;  %v801_v8 = vshrl.u32 %v800_v34, 7 }
 0x112   : > { %1629 = vmatpush1.bf16.msra.mxu0 %v2287_v25  ;;  %1711 = vmatpush1.bf16.msra.mxu1 %v2290_v36  ;;  %v570_v38 = vadd.f32 %v569_v13, %v568_v10  ;;  %v598_v47 = vadd.f32 %v597_v2, %v596_v16  ;;  %v906_v50 = vsel %vm886_vm1, %v862_v26, %v905_v39 }
 0x113   : > { %1630 = vmatprep.subr.bf16.mxu0 %v2295_v42  ;;  %1712 = vmatprep.subr.bf16.mxu1 %v2298_v44  ;;  %v907_v31 = vsel %vm888_vm2, %v866_v11, %v906_v50  ;;  %v802_v25 = vsub.s32 0, %v801_v8  ;;  %v810_v40 = vsub.s32 2, %v801_v8  ;;  %v806_v30 = vsub.s32 1, %v801_v8 }
 0x114   : > { %v632_v17 = vmul.f32 0.0625, %v570_v38  ;;  %v636_v35 = vmul.f32 0.0625, %v598_v47  ;;  %v908_v52 = vsel %vm890_vm3, %v870_v1, %v907_v31  ;;  %v814_v9 = vsub.s32 3, %v801_v8 }
 0x115   : > { %v909_v56 = vsel %vm892_vm4, %v874_v12, %v908_v52  ;;  %v803_v36 = vrot.slane %v798_v29, %v802_v25  ;;  %v811_v32 = vrot.slane %v798_v29, %v810_v40  ;;  %v807_v49 = vrot.slane %v798_v29, %v806_v30 }
 0x116   : > { %1631 = vmatpush1.bf16.msra.mxu0 %v2293_v7  ;;  %1713 = vmatpush1.bf16.msra.mxu1 %v2296_v15  ;;  %v664_v41 = vpack.c.bf16 %v632_v17, %v632_v17  ;;  %v668_v60 = vpack.c.bf16 %v636_v35, %v636_v35  ;;  %v815_v28 = vrot.slane %v798_v29, %v814_v9 }
 0x117   : > { %1632 = vmatprep.subr.bf16.mxu0 %v2301_v59  ;;  %1714 = vmatprep.subr.bf16.mxu1 %v2304_v43  ;;  %v1740_v14 = vrot.slane %v1735_v37, %v802_v25  ;;  %v1744_v55 = vrot.slane %v1735_v37, %v806_v30  ;;  %v1748_v11 = vrot.slane %v1735_v37, %v810_v40 }
 0x118   : > { %v878_v6 = vunpack.c.l.b16 %v664_v41  ;;  %v882_v4 = vunpack.c.l.b16 %v668_v60  ;;  %v1752_v47 = vrot.slane %v1735_v37, %v814_v9 }
 0x11a   : > { %1633 = vmatpush1.bf16.msra.mxu0 %v2299_v33  ;;  %1715 = vmatpush1.bf16.msra.mxu1 %v2302_v3  ;;  %v910_v20 = vsel %vm894_vm5, %v878_v6, %v909_v56  ;;  %v1767_v3 = vstv %s1766_s25 }
 0x11b   : > { %1634 = vmatprep.subr.bf16.mxu0 %v2307_v61  ;;  %1716 = vmatprep.subr.bf16.mxu1 %v2310_v19  ;;  %v911_v23 = vsel %vm896_vm6, %v882_v4, %v910_v20 }
 0x11c   : > { %v921_v24 = vpack.c.b16 %v911_v23, %v911_v23 }
 0x11e   : > { %1635 = vmatpush1.bf16.msra.mxu0 %v2305_v46  ;;  %1717 = vmatpush1.bf16.msra.mxu1 %v2308_v21 }
 0x11f   : > { %1636 = vmatprep.subr.bf16.mxu0 %v2313_v54  ;;  %1718 = vmatprep.subr.bf16.mxu1 %v2316_v5 }
 0x122   : > { %1637 = vmatpush1.bf16.msra.mxu0 %v2311_v57  ;;  %1719 = vmatpush1.bf16.msra.mxu1 %v2314_v63 }
 0x123   : > { %1638 = vmatprep.subr.bf16.mxu0 %v2319_v0  ;;  %1720 = vmatprep.subr.bf16.mxu1 %v2322_v48 }
 0x126   : > { %1639 = vmatpush1.bf16.msra.mxu0 %v2317_v51  ;;  %1721 = vmatpush1.bf16.msra.mxu1 %v2320_v27 }
 0x129   : > { %1641 = vmatmul.mubr.bf16.vlgmr.msra.gmra.mrb[0].mxu0 %v921_v24  ;;  %1723 = vmatmul.mubr.bf16.vlgmr.msra.gmra.mrb[0].mxu1 %v921_v24 }
 0x1fc   : > { %v1642_v42 = vpop.f32.mrb[0].mxu0  ;;  %v1724_v44 = vpop.f32.mrb[0].mxu1 }
 0x1fd   : > { %v2040_v10 = vadd.f32 %v1642_v42, %v803_v36  ;;  %v2042_v53 = vadd.f32 %v1724_v44, %v811_v32  ;;  %v1644_v16 = vpop.f32.mrb[1].mxu0  ;;  %v1726_v22 = vpop.f32.mrb[1].mxu1 }
 0x1fe   : > { %v2041_v58 = vadd.f32 %v1644_v16, %v807_v49  ;;  %v2043_v13 = vadd.f32 %v1726_v22, %v815_v28  ;;  %v1646_v62 = vpop.f32.mrb[2].mxu0  ;;  %v1728_v18 = vpop.f32.mrb[2].mxu1 }
 0x1ff   : > { %v1731_v26 = vmax.f32 %v2040_v10, 0.0  ;;  %v1647_v7 = vpop.f32.mrb[3].mxu0  ;;  %v1729_v15 = vpop.f32.mrb[3].mxu1  ;;  %v1733_v2 = vmax.f32 %v2042_v53, 0.0 }
 0x200   : > { %v1732_v59 = vmax.f32 %v2041_v58, 0.0  ;;  %v1734_v39 = vmax.f32 %v2043_v13, 0.0 }
 0x201   : > { %v1757_v43 = vmul.f32 %v1740_v14, %v1731_v26  ;;  %v1759_v45 = vmul.f32 %v1748_v11, %v1733_v2 }
 0x202   : > { %v1758_v38 = vmul.f32 %v1744_v55, %v1732_v59  ;;  %v1760_v17 = vmul.f32 %v1752_v47, %v1734_v39 }
 0x204   : > { %v1761_v50 = vadd.f32 %v1758_v38, %v1757_v43 }
 0x206   : > { %v1762_v1 = vadd.f32 %v1761_v50, %v1759_v45 }
 0x208   : > { %v1763_v33 = vadd.f32 %v1762_v1, %v1760_v17 }
 0x20a   : > { %1764 = vadd.xlane.f32.xlu0 %v1763_v33 }
 0x297   : > { %v1765_v35 = vpop.xlane.xlu0 %1764 }
 0x298   : > { %v1768_v31 = vadd.f32 %v1767_v3, %v1765_v35 }
 0x29a   : > { %v1769_v61 = vsub.f32 0.0, %v1768_v31 }
 0x29c   : > { %v1770_v19 = vmul.f32 1.442695, %v1769_v61 }
 0x29e   : > { %2323 = vpow2.f32 %v1770_v19 }
 0x2a8   : > { %v2324_v41 = vpop.eup %2323 }
 0x2a9   : > { %v1772_v12 = vadd.f32 1.0, %v2324_v41 }
 0x2ab   : > { %2325 = vrcp.f32 %v1772_v12 }
 0x2b5   : > { %v2326_v52 = vpop.eup %2325 }
 0x2b6   : > { %1776 = vst.msk [vmem:[%s284_s24] sm:$0xff] %vm1775_vm7, %v2326_v52 }
 0x2b7   : > { %2454 = shalt.err (!%p2451_p4)
}
 0x2b8   : > { %s2455_s29 = scalar_lea.hbm %s3031_s7, 128  ;;  %s2459_s6 = scalar_lea.hbm %s3080_s5, 256 }
 0x2b9   : > { %p2456_p9 = scmp.ne.s32.totalorder %s3031_s7, %s2455_s29  ;;  %p2460_p8 = scmp.lt.u32.totalorder %s3031_s7, %s3080_s5 }
 0x2ba   : > { %p2461_p13 = scmp.lt.u32.totalorder %s2459_s6, %s2455_s29  ;;  %p2463_p10 = scmp.lt.u32.totalorder %s2455_s29, %s3031_s7 }
 0x2bb   : > { %p2457_p0 = pnand %p2456_p9, %p2705_p5 }
 0x2bc   : > { %p2462_p6 = por %p2461_p13, %p2460_p8 }
 0x2bd   : > { %p2458_p11 = pneg %p2457_p0 }
 0x2be   : > { %p2464_p3 = por %p2463_p10, %p2462_p6 }
 0x2c0   : > { %p2465_p7 = pnand %p2464_p3, %p2458_p11 }
 0x2c2   : > { %2468 = shalt.err (!%p2465_p7)
}
 0x2c3   : > { %2066 = dma.vmem_to_hbm [thread:$0]  (%p2705_p5), %s3033_s11, 128, %s3031_s7, %s1778_s8  }
 0x2c4 PF: > { %s1803_s27 = sand.u32 1, %s2503_s20   ;;  %p3106_p12 = scmp.ne.s32.totalorder %s3085_s26, 0 }
 0x2c5   : > { %p3107_p1 = scmp.ge.s32.totalorder %s2515_s23, 2  ;;  %s1804_s19 = scalar_lea.sflag [#allocation5], %s1803_s27 }
 0x2c7   : > { %p2083_p2 = pnand %p3107_p1, %p3106_p12 }
 0x2c9   : > { %2498 = dma.done.wait (!%p2083_p2), %s1804_s19, 128  }
 0x2ca   : > { %2500 = vsyncadd (!%p2083_p2), %s1804_s19, 4294967168  ;;  %p21_p4 = scmp.ge.s32.totalorder %s2691_s15, 4   ;;  %s3108_s20 = smov %s2507_s21 }
 0x2cb   : > { %s3109_s21 = smov %s2511_s22  ;;  %s3110_s22 = smov %s2701_s17 }
 0x2cc   : > { %s3111_s23 = smov %s2691_s15  ;;  %23 = sbr.rel (!%p21_p4) target bundleno = 9 (0x9), region = 97 }
 0x2d3   :  { %1809 = vsyncpa [#allocation4], 1 }
 0x2d4   :  { %1811 = vsyncpa [#allocation4 + $0x1], 1 }
 0x2d5   :  { %1812 = vsyncpa [#allocation7], 1 }
 0x2d6   :  { %1813 = vsyncpa [#allocation10], 1 }
 0x2d7   :  { %1814 = vsyncpa [#allocation5], 1 }
 0x2d8   :  { %1816 = vsyncpa [#allocation5 + $0x1], 1 }

</bundles_post_ra>
